<compile_context>
chip_gen: v7x
topology: tpu7x:2x2x1
jax: 0.10.0
libtpu: 0.0.40
codegen_flags: <defaults>
</compile_context>

<pallas_src>
import jax
import jax.numpy as jnp
from jax.experimental import pallas as pl
from jax.experimental.pallas import tpu as pltpu


# ----------------------------------------------------------------------------
# Pallas kernel
# ----------------------------------------------------------------------------
def rnn_head_kernel(xflat_ref, w0_ref, b0_ref, whh0_ref, w1h0_ref, w1h1_ref,
                    b1_ref, fcw_ref, fcb_ref, out_ref):
    TB = xflat_ref.shape[0]          # T * B
    H2 = whh0_ref.shape[0]           # 2 * hidden (both directions, lane-concat)
    H = H2 // 2
    G = 4 * H2                       # 8 * hidden (combined gate width)
    N = out_ref.shape[-1]
    T = TB // _STATIC_B
    B = _STATIC_B

    # ---- Hoisted layer-0 input projection for both directions: one MXU call.
    #      Result stays register-resident (a handful of vregs at these shapes).
    pre = jnp.dot(xflat_ref[...], w0_ref[...],
                  preferred_element_type=jnp.float32) + b0_ref[...]   # (T*B, 8H)

    whh0 = whh0_ref[...]             # (2H, 8H) block-diag hidden weights, layer 0
    w1h0 = w1h0_ref[...]             # (2H, 8H) layer-1 input (=h0) weights
    w1h1 = w1h1_ref[...]             # (2H, 8H) layer-1 hidden (=h1) weights
    b1 = jnp.broadcast_to(b1_ref[...], (B, G))   # hoisted broadcast (layer-1 bias)

    def gate(gates):
        # Combined gate layout: sigmoid gates (i, f, o) occupy lanes 0:6H,
        # the tanh gate (g) occupies lanes 6H:8H  ->  2 transcendental regions.
        sig = jax.nn.sigmoid(gates[:, :3 * H2])
        i = sig[:, 0:H2]
        f = sig[:, H2:2 * H2]
        o = sig[:, 2 * H2:3 * H2]
        g = jnp.tanh(gates[:, 3 * H2:])
        return i, f, o, g

    zeros = jnp.zeros((B, H2), jnp.float32)
    h0 = c0 = h1 = c1 = zeros
    h1_seq = []

    # T is static and small -> plain Python loop with concrete t (full unroll,
    # static slices, no scratch traffic).  Cap the unroll / go back to scratch-
    # resident intermediates if T ever grows large (vreg pressure).
    for t in range(T):
        # ---- layer 0, both directions at once (input term is precomputed).
        g0 = pre[t * B:(t + 1) * B, :] + jnp.dot(
            h0, whh0, preferred_element_type=jnp.float32)
        i0, f0, o0, gg0 = gate(g0)
        c0 = f0 * c0 + i0 * gg0
        h0 = o0 * jnp.tanh(c0)
        # ---- layer 1, both directions; two accumulated dots (no lane-concat).
        g1 = (b1
              + jnp.dot(h0, w1h0, preferred_element_type=jnp.float32)
              + jnp.dot(h1, w1h1, preferred_element_type=jnp.float32))
        i1, f1, o1, gg1 = gate(g1)
        c1 = f1 * c1 + i1 * gg1
        h1 = o1 * jnp.tanh(c1)
        h1_seq.append(h1)            # register-resident; no masked scratch store

    # ---- Fused FC epilogue (single matmul).  Output time order: row t uses the
    #      forward direction at step t and the reverse direction at step T-1-t.
    x12 = jnp.concatenate(
        [jnp.concatenate([h1_seq[t][:, 0:H], h1_seq[T - 1 - t][:, H:H2]], axis=1)
         for t in range(T)],
        axis=0)                                                   # (T*B, 2H)
    logits = jnp.dot(x12, fcw_ref[...],
                     preferred_element_type=jnp.float32) + fcb_ref[...]
    # Single lane-dense, unmasked store of the whole (T*B, N) slab.
    out_ref[...] = logits.astype(out_ref.dtype)


# B must be known inside the kernel to split T*B; set by the wrapper before trace.
_STATIC_B = 1


# ----------------------------------------------------------------------------
# Wrapper: weight packing (gate reorder + direction interleave) and pallas_call
# ----------------------------------------------------------------------------
def _ifog_slices(H):
    # PyTorch LSTM packs gate rows as [i, f, g, o]; we use [i, f, o, g].
    return (slice(0, H), slice(H, 2 * H), slice(3 * H, 4 * H), slice(2 * H, 3 * H))


def _combine_w(wA, wB, H):
    """wA, wB: (4H, Din) per-direction weights (PyTorch layout).
    Returns (2*Din, 8H) mapping the lane-concat input [inA | inB] to the combined
    gate layout [iA iB | fA fB | oA oB | gA gB]."""
    Din = wA.shape[1]
    z = jnp.zeros((Din, H), jnp.float32)
    blocks = []
    for sl in _ifog_slices(H):
        top = jnp.concatenate([wA[sl].T, z], axis=1)          # (Din, 2H)
        bot = jnp.concatenate([z, wB[sl].T], axis=1)          # (Din, 2H)
        blocks.append(jnp.concatenate([top, bot], axis=0))    # (2*Din, 2H)
    return jnp.concatenate(blocks, axis=1)                    # (2*Din, 8H)


def _combine_b(pA, pB, H):
    bA = pA['b_ih'] + pA['b_hh']
    bB = pB['b_ih'] + pB['b_hh']
    parts = []
    for sl in _ifog_slices(H):
        parts.append(bA[sl])
        parts.append(bB[sl])
    return jnp.concatenate(parts)[None, :]                    # (1, 8H)


def rnn_head_forward(x_nchw, params):
    global _STATIC_B
    b, c, h, w = x_nchw.shape
    T = h * w
    H = params['hidden_size']
    N = params['n_class']

    # Reshape module: (B, C, H, W) -> (B, T, C); kernel consumes time-major.
    x_tbc = jnp.transpose(x_nchw.reshape(b, c, T), (2, 0, 1))        # (T, B, C)
    # Bake the reverse direction's time flip into the input: [x[t] | x[T-1-t]],
    # and pre-flatten to (T*B, 2C) so the kernel does no relayout reshapes.
    x_cat = jnp.concatenate([x_tbc, x_tbc[::-1]], axis=-1)           # (T, B, 2C)
    x_flat = x_cat.reshape(T * b, 2 * c)                             # (T*B, 2C)

    l0a, l1a = params['lstm0']
    l0b, l1b = params['lstm1']

    w0 = _combine_w(l0a['w_ih'], l0b['w_ih'], H)                     # (2C, 8H)
    b0 = _combine_b(l0a, l0b, H)                                     # (1, 8H)
    whh0 = _combine_w(l0a['w_hh'], l0b['w_hh'], H)                   # (2H, 8H)
    w1h0 = _combine_w(l1a['w_ih'], l1b['w_ih'], H)                   # (2H, 8H)
    w1h1 = _combine_w(l1a['w_hh'], l1b['w_hh'], H)                   # (2H, 8H)
    b1 = _combine_b(l1a, l1b, H)                                     # (1, 8H)
    fcw = params['fc_w'].T                                           # (2H, N)
    fcb = params['fc_b'][None, :]                                    # (1, N)

    _STATIC_B = b   # static batch for the unrolled kernel

    out2d = pl.pallas_call(
        rnn_head_kernel,
        out_shape=jax.ShapeDtypeStruct((T * b, N), jnp.float32),
        in_specs=[pl.BlockSpec(memory_space=pltpu.MemorySpace.VMEM)] * 9,
        out_specs=pl.BlockSpec(memory_space=pltpu.MemorySpace.VMEM),
    )(x_flat, w0, b0, whh0, w1h0, w1h1, b1, fcw, fcb)

    # (T*B, N) -> (B, T, N): free layout plumbing outside the kernel.
    return jnp.transpose(out2d.reshape(T, b, N), (1, 0, 2))


# ----------------------------------------------------------------------------
# Deterministic parameter initialization (same shapes as the PyTorch module)
# ----------------------------------------------------------------------------
def init_params(key, in_channels, hidden_size, n_class):
    k = 1.0 / float(hidden_size) ** 0.5
    keys = iter(jax.random.split(key, 64))

    def u(shape):
        return jax.random.uniform(next(keys), shape, jnp.float32, -k, k)

    def lstm_layer(in_dim):
        return dict(w_ih=u((4 * hidden_size, in_dim)),
                    w_hh=u((4 * hidden_size, hidden_size)),
                    b_ih=u((4 * hidden_size,)),
                    b_hh=u((4 * hidden_size,)))

    return dict(
        hidden_size=hidden_size, n_class=n_class,
        lstm0=[lstm_layer(in_channels), lstm_layer(hidden_size)],
        lstm1=[lstm_layer(in_channels), lstm_layer(hidden_size)],
        fc_w=u((n_class, 2 * hidden_size)),
        fc_b=u((n_class,)),
    )


# ----------------------------------------------------------------------------
# Pure-JAX reference (mirrors the PyTorch forward) for validation
# ----------------------------------------------------------------------------
def _lstm_ref(x_btc, layers):
    out = x_btc
    for p in layers:
        w_ih, w_hh, b_ih, b_hh = p['w_ih'], p['w_hh'], p['b_ih'], p['b_hh']
        H = w_hh.shape[1]
        B = out.shape[0]

        def step(carry, xt, w_ih=w_ih, w_hh=w_hh, b_ih=b_ih, b_hh=b_hh):
            h, c = carry
            gates = xt @ w_ih.T + h @ w_hh.T + b_ih + b_hh
            i, f, g, o = jnp.split(gates, 4, axis=-1)
            c = jax.nn.sigmoid(f) * c + jax.nn.sigmoid(i) * jnp.tanh(g)
            h = jax.nn.sigmoid(o) * jnp.tanh(c)
            return (h, c), h

        init = (jnp.zeros((B, H), jnp.float32), jnp.zeros((B, H), jnp.float32))
        _, hs = jax.lax.scan(step, init, jnp.swapaxes(out, 0, 1))
        out = jnp.swapaxes(hs, 0, 1)
    return out


def rnn_head_ref(x_nchw, params):
    b, c, h, w = x_nchw.shape
    x = x_nchw.reshape(b, c, h * w).transpose(0, 2, 1)
    x1 = _lstm_ref(x, params['lstm0'])
    x2 = jnp.flip(_lstm_ref(jnp.flip(x, axis=1), params['lstm1']), axis=1)
    cat = jnp.concatenate([x1, x2], axis=2)
    return cat @ params['fc_w'].T + params['fc_b']


# ----------------------------------------------------------------------------
if __name__ == "__main__":
    # Small shapes consistent with the module: NCHW input, T = H*W.
    B, C, Hsp, Wsp = 2, 32, 2, 4          # in_channels = 32, T = 8
    HIDDEN, N_CLASS = 32, 128

    key = jax.random.PRNGKey(0)
    kx, kp = jax.random.split(key)
    x = jax.random.normal(kx, (B, C, Hsp, Wsp), jnp.float32)
    params = init_params(kp, C, HIDDEN, N_CLASS)

    out = rnn_head_forward(x, params)
    out = jax.block_until_ready(out)

    ref = rnn_head_ref(x, params)
    assert out.shape == (B, Hsp * Wsp, N_CLASS), out.shape
    max_err = float(jnp.max(jnp.abs(out - ref)))
    assert jnp.allclose(out, ref, atol=1e-4, rtol=1e-4), max_err

    print("KERNEL_OK")
</pallas_src>

<mosaic_0001>
module attributes {stable_mosaic.version = 11 : i64} {
  func.func @rnn_head_kernel(%arg0: memref<16x64xf32, #tpu.memory_space<vmem>>, %arg1: memref<64x256xf32, #tpu.memory_space<vmem>>, %arg2: memref<1x256xf32, #tpu.memory_space<vmem>>, %arg3: memref<64x256xf32, #tpu.memory_space<vmem>>, %arg4: memref<64x256xf32, #tpu.memory_space<vmem>>, %arg5: memref<64x256xf32, #tpu.memory_space<vmem>>, %arg6: memref<1x256xf32, #tpu.memory_space<vmem>>, %arg7: memref<64x128xf32, #tpu.memory_space<vmem>>, %arg8: memref<1x128xf32, #tpu.memory_space<vmem>>, %arg9: memref<16x128xf32, #tpu.memory_space<vmem>>) attributes {dimension_semantics = [], scalar_prefetch = 0 : i64, scratch_operands = 0 : i64, tpu.core_type = #tpu.core_type<tc>} {
    %c0 = arith.constant 0 : index
    %c0_0 = arith.constant 0 : index
    %0 = vector.load %arg0[%c0, %c0_0] : memref<16x64xf32, #tpu.memory_space<vmem>>, vector<16x64xf32>
    %c0_1 = arith.constant 0 : index
    %c0_2 = arith.constant 0 : index
    %1 = vector.load %arg1[%c0_1, %c0_2] : memref<64x256xf32, #tpu.memory_space<vmem>>, vector<64x256xf32>
    %cst = arith.constant dense<0.000000e+00> : vector<16x256xf32>
    %2 = tpu.matmul %0, %1, %cst {dimension_numbers = #tpu.dot_dimension_numbers<[1], [0], [0], [1], [0, 0, 1, 1], [], []>} : vector<16x64xf32>, vector<64x256xf32>, vector<16x256xf32> -> vector<16x256xf32>
    %c0_3 = arith.constant 0 : index
    %c0_4 = arith.constant 0 : index
    %3 = vector.load %arg2[%c0_3, %c0_4] : memref<1x256xf32, #tpu.memory_space<vmem>>, vector<1x256xf32>
    %4 = vector.broadcast %3 : vector<1x256xf32> to vector<16x256xf32>
    %5 = arith.addf %2, %4 : vector<16x256xf32>
    %c0_5 = arith.constant 0 : index
    %c0_6 = arith.constant 0 : index
    %6 = vector.load %arg3[%c0_5, %c0_6] : memref<64x256xf32, #tpu.memory_space<vmem>>, vector<64x256xf32>
    %c0_7 = arith.constant 0 : index
    %c0_8 = arith.constant 0 : index
    %7 = vector.load %arg4[%c0_7, %c0_8] : memref<64x256xf32, #tpu.memory_space<vmem>>, vector<64x256xf32>
    %c0_9 = arith.constant 0 : index
    %c0_10 = arith.constant 0 : index
    %8 = vector.load %arg5[%c0_9, %c0_10] : memref<64x256xf32, #tpu.memory_space<vmem>>, vector<64x256xf32>
    %c0_11 = arith.constant 0 : index
    %c0_12 = arith.constant 0 : index
    %9 = vector.load %arg6[%c0_11, %c0_12] : memref<1x256xf32, #tpu.memory_space<vmem>>, vector<1x256xf32>
    %10 = vector.shape_cast %9 : vector<1x256xf32> to vector<1x256xf32>
    %11 = vector.broadcast %10 : vector<1x256xf32> to vector<2x256xf32>
    %cst_13 = arith.constant 0.000000e+00 : f32
    %12 = vector.broadcast %cst_13 : f32 to vector<2x64xf32>
    %13 = vector.extract_strided_slice %5 {offsets = [0, 0], sizes = [2, 256], strides = [1, 1]} : vector<16x256xf32> to vector<2x256xf32>
    %cst_14 = arith.constant dense<0.000000e+00> : vector<2x256xf32>
    %14 = tpu.matmul %12, %6, %cst_14 {dimension_numbers = #tpu.dot_dimension_numbers<[1], [0], [0], [1], [0, 0, 1, 1], [], []>} : vector<2x64xf32>, vector<64x256xf32>, vector<2x256xf32> -> vector<2x256xf32>
    %15 = arith.addf %13, %14 : vector<2x256xf32>
    %16 = vector.extract_strided_slice %15 {offsets = [0, 0], sizes = [2, 192], strides = [1, 1]} : vector<2x256xf32> to vector<2x192xf32>
    %17 = arith.negf %16 : vector<2x192xf32>
    %18 = math.exp %17 : vector<2x192xf32>
    %cst_15 = arith.constant 1.000000e+00 : f32
    %19 = vector.broadcast %cst_15 : f32 to vector<2x192xf32>
    %20 = arith.addf %19, %18 : vector<2x192xf32>
    %21 = arith.divf %19, %20 : vector<2x192xf32>
    %22 = vector.extract_strided_slice %21 {offsets = [0, 0], sizes = [2, 64], strides = [1, 1]} : vector<2x192xf32> to vector<2x64xf32>
    %23 = vector.extract_strided_slice %21 {offsets = [0, 64], sizes = [2, 64], strides = [1, 1]} : vector<2x192xf32> to vector<2x64xf32>
    %24 = vector.extract_strided_slice %21 {offsets = [0, 128], sizes = [2, 64], strides = [1, 1]} : vector<2x192xf32> to vector<2x64xf32>
    %25 = vector.extract_strided_slice %15 {offsets = [0, 192], sizes = [2, 64], strides = [1, 1]} : vector<2x256xf32> to vector<2x64xf32>
    %26 = math.tanh %25 : vector<2x64xf32>
    %27 = arith.mulf %23, %12 : vector<2x64xf32>
    %28 = arith.mulf %22, %26 : vector<2x64xf32>
    %29 = arith.addf %27, %28 : vector<2x64xf32>
    %30 = math.tanh %29 : vector<2x64xf32>
    %31 = arith.mulf %24, %30 : vector<2x64xf32>
    %cst_16 = arith.constant dense<0.000000e+00> : vector<2x256xf32>
    %32 = tpu.matmul %31, %7, %cst_16 {dimension_numbers = #tpu.dot_dimension_numbers<[1], [0], [0], [1], [0, 0, 1, 1], [], []>} : vector<2x64xf32>, vector<64x256xf32>, vector<2x256xf32> -> vector<2x256xf32>
    %33 = arith.addf %11, %32 : vector<2x256xf32>
    %cst_17 = arith.constant dense<0.000000e+00> : vector<2x256xf32>
    %34 = tpu.matmul %12, %8, %cst_17 {dimension_numbers = #tpu.dot_dimension_numbers<[1], [0], [0], [1], [0, 0, 1, 1], [], []>} : vector<2x64xf32>, vector<64x256xf32>, vector<2x256xf32> -> vector<2x256xf32>
    %35 = arith.addf %33, %34 : vector<2x256xf32>
    %36 = vector.extract_strided_slice %35 {offsets = [0, 0], sizes = [2, 192], strides = [1, 1]} : vector<2x256xf32> to vector<2x192xf32>
    %37 = arith.negf %36 : vector<2x192xf32>
    %38 = math.exp %37 : vector<2x192xf32>
    %cst_18 = arith.constant 1.000000e+00 : f32
    %39 = vector.broadcast %cst_18 : f32 to vector<2x192xf32>
    %40 = arith.addf %39, %38 : vector<2x192xf32>
    %41 = arith.divf %39, %40 : vector<2x192xf32>
    %42 = vector.extract_strided_slice %41 {offsets = [0, 0], sizes = [2, 64], strides = [1, 1]} : vector<2x192xf32> to vector<2x64xf32>
    %43 = vector.extract_strided_slice %41 {offsets = [0, 64], sizes = [2, 64], strides = [1, 1]} : vector<2x192xf32> to vector<2x64xf32>
    %44 = vector.extract_strided_slice %41 {offsets = [0, 128], sizes = [2, 64], strides = [1, 1]} : vector<2x192xf32> to vector<2x64xf32>
    %45 = vector.extract_strided_slice %35 {offsets = [0, 192], sizes = [2, 64], strides = [1, 1]} : vector<2x256xf32> to vector<2x64xf32>
    %46 = math.tanh %45 : vector<2x64xf32>
    %47 = arith.mulf %43, %12 : vector<2x64xf32>
    %48 = arith.mulf %42, %46 : vector<2x64xf32>
    %49 = arith.addf %47, %48 : vector<2x64xf32>
    %50 = math.tanh %49 : vector<2x64xf32>
    %51 = arith.mulf %44, %50 : vector<2x64xf32>
    %52 = vector.extract_strided_slice %5 {offsets = [2, 0], sizes = [2, 256], strides = [1, 1]} : vector<16x256xf32> to vector<2x256xf32>
    %cst_19 = arith.constant dense<0.000000e+00> : vector<2x256xf32>
    %53 = tpu.matmul %31, %6, %cst_19 {dimension_numbers = #tpu.dot_dimension_numbers<[1], [0], [0], [1], [0, 0, 1, 1], [], []>} : vector<2x64xf32>, vector<64x256xf32>, vector<2x256xf32> -> vector<2x256xf32>
    %54 = arith.addf %52, %53 : vector<2x256xf32>
    %55 = vector.extract_strided_slice %54 {offsets = [0, 0], sizes = [2, 192], strides = [1, 1]} : vector<2x256xf32> to vector<2x192xf32>
    %56 = arith.negf %55 : vector<2x192xf32>
    %57 = math.exp %56 : vector<2x192xf32>
    %cst_20 = arith.constant 1.000000e+00 : f32
    %58 = vector.broadcast %cst_20 : f32 to vector<2x192xf32>
    %59 = arith.addf %58, %57 : vector<2x192xf32>
    %60 = arith.divf %58, %59 : vector<2x192xf32>
    %61 = vector.extract_strided_slice %60 {offsets = [0, 0], sizes = [2, 64], strides = [1, 1]} : vector<2x192xf32> to vector<2x64xf32>
    %62 = vector.extract_strided_slice %60 {offsets = [0, 64], sizes = [2, 64], strides = [1, 1]} : vector<2x192xf32> to vector<2x64xf32>
    %63 = vector.extract_strided_slice %60 {offsets = [0, 128], sizes = [2, 64], strides = [1, 1]} : vector<2x192xf32> to vector<2x64xf32>
    %64 = vector.extract_strided_slice %54 {offsets = [0, 192], sizes = [2, 64], strides = [1, 1]} : vector<2x256xf32> to vector<2x64xf32>
    %65 = math.tanh %64 : vector<2x64xf32>
    %66 = arith.mulf %62, %29 : vector<2x64xf32>
    %67 = arith.mulf %61, %65 : vector<2x64xf32>
    %68 = arith.addf %66, %67 : vector<2x64xf32>
    %69 = math.tanh %68 : vector<2x64xf32>
    %70 = arith.mulf %63, %69 : vector<2x64xf32>
    %cst_21 = arith.constant dense<0.000000e+00> : vector<2x256xf32>
    %71 = tpu.matmul %70, %7, %cst_21 {dimension_numbers = #tpu.dot_dimension_numbers<[1], [0], [0], [1], [0, 0, 1, 1], [], []>} : vector<2x64xf32>, vector<64x256xf32>, vector<2x256xf32> -> vector<2x256xf32>
    %72 = arith.addf %11, %71 : vector<2x256xf32>
    %cst_22 = arith.constant dense<0.000000e+00> : vector<2x256xf32>
    %73 = tpu.matmul %51, %8, %cst_22 {dimension_numbers = #tpu.dot_dimension_numbers<[1], [0], [0], [1], [0, 0, 1, 1], [], []>} : vector<2x64xf32>, vector<64x256xf32>, vector<2x256xf32> -> vector<2x256xf32>
    %74 = arith.addf %72, %73 : vector<2x256xf32>
    %75 = vector.extract_strided_slice %74 {offsets = [0, 0], sizes = [2, 192], strides = [1, 1]} : vector<2x256xf32> to vector<2x192xf32>
    %76 = arith.negf %75 : vector<2x192xf32>
    %77 = math.exp %76 : vector<2x192xf32>
    %cst_23 = arith.constant 1.000000e+00 : f32
    %78 = vector.broadcast %cst_23 : f32 to vector<2x192xf32>
    %79 = arith.addf %78, %77 : vector<2x192xf32>
    %80 = arith.divf %78, %79 : vector<2x192xf32>
    %81 = vector.extract_strided_slice %80 {offsets = [0, 0], sizes = [2, 64], strides = [1, 1]} : vector<2x192xf32> to vector<2x64xf32>
    %82 = vector.extract_strided_slice %80 {offsets = [0, 64], sizes = [2, 64], strides = [1, 1]} : vector<2x192xf32> to vector<2x64xf32>
    %83 = vector.extract_strided_slice %80 {offsets = [0, 128], sizes = [2, 64], strides = [1, 1]} : vector<2x192xf32> to vector<2x64xf32>
    %84 = vector.extract_strided_slice %74 {offsets = [0, 192], sizes = [2, 64], strides = [1, 1]} : vector<2x256xf32> to vector<2x64xf32>
    %85 = math.tanh %84 : vector<2x64xf32>
    %86 = arith.mulf %82, %49 : vector<2x64xf32>
    %87 = arith.mulf %81, %85 : vector<2x64xf32>
    %88 = arith.addf %86, %87 : vector<2x64xf32>
    %89 = math.tanh %88 : vector<2x64xf32>
    %90 = arith.mulf %83, %89 : vector<2x64xf32>
    %91 = vector.extract_strided_slice %5 {offsets = [4, 0], sizes = [2, 256], strides = [1, 1]} : vector<16x256xf32> to vector<2x256xf32>
    %cst_24 = arith.constant dense<0.000000e+00> : vector<2x256xf32>
    %92 = tpu.matmul %70, %6, %cst_24 {dimension_numbers = #tpu.dot_dimension_numbers<[1], [0], [0], [1], [0, 0, 1, 1], [], []>} : vector<2x64xf32>, vector<64x256xf32>, vector<2x256xf32> -> vector<2x256xf32>
    %93 = arith.addf %91, %92 : vector<2x256xf32>
    %94 = vector.extract_strided_slice %93 {offsets = [0, 0], sizes = [2, 192], strides = [1, 1]} : vector<2x256xf32> to vector<2x192xf32>
    %95 = arith.negf %94 : vector<2x192xf32>
    %96 = math.exp %95 : vector<2x192xf32>
    %cst_25 = arith.constant 1.000000e+00 : f32
    %97 = vector.broadcast %cst_25 : f32 to vector<2x192xf32>
    %98 = arith.addf %97, %96 : vector<2x192xf32>
    %99 = arith.divf %97, %98 : vector<2x192xf32>
    %100 = vector.extract_strided_slice %99 {offsets = [0, 0], sizes = [2, 64], strides = [1, 1]} : vector<2x192xf32> to vector<2x64xf32>
    %101 = vector.extract_strided_slice %99 {offsets = [0, 64], sizes = [2, 64], strides = [1, 1]} : vector<2x192xf32> to vector<2x64xf32>
    %102 = vector.extract_strided_slice %99 {offsets = [0, 128], sizes = [2, 64], strides = [1, 1]} : vector<2x192xf32> to vector<2x64xf32>
    %103 = vector.extract_strided_slice %93 {offsets = [0, 192], sizes = [2, 64], strides = [1, 1]} : vector<2x256xf32> to vector<2x64xf32>
    %104 = math.tanh %103 : vector<2x64xf32>
    %105 = arith.mulf %101, %68 : vector<2x64xf32>
    %106 = arith.mulf %100, %104 : vector<2x64xf32>
    %107 = arith.addf %105, %106 : vector<2x64xf32>
    %108 = math.tanh %107 : vector<2x64xf32>
    %109 = arith.mulf %102, %108 : vector<2x64xf32>
    %cst_26 = arith.constant dense<0.000000e+00> : vector<2x256xf32>
    %110 = tpu.matmul %109, %7, %cst_26 {dimension_numbers = #tpu.dot_dimension_numbers<[1], [0], [0], [1], [0, 0, 1, 1], [], []>} : vector<2x64xf32>, vector<64x256xf32>, vector<2x256xf32> -> vector<2x256xf32>
    %111 = arith.addf %11, %110 : vector<2x256xf32>
    %cst_27 = arith.constant dense<0.000000e+00> : vector<2x256xf32>
    %112 = tpu.matmul %90, %8, %cst_27 {dimension_numbers = #tpu.dot_dimension_numbers<[1], [0], [0], [1], [0, 0, 1, 1], [], []>} : vector<2x64xf32>, vector<64x256xf32>, vector<2x256xf32> -> vector<2x256xf32>
    %113 = arith.addf %111, %112 : vector<2x256xf32>
    %114 = vector.extract_strided_slice %113 {offsets = [0, 0], sizes = [2, 192], strides = [1, 1]} : vector<2x256xf32> to vector<2x192xf32>
    %115 = arith.negf %114 : vector<2x192xf32>
    %116 = math.exp %115 : vector<2x192xf32>
    %cst_28 = arith.constant 1.000000e+00 : f32
    %117 = vector.broadcast %cst_28 : f32 to vector<2x192xf32>
    %118 = arith.addf %117, %116 : vector<2x192xf32>
    %119 = arith.divf %117, %118 : vector<2x192xf32>
    %120 = vector.extract_strided_slice %119 {offsets = [0, 0], sizes = [2, 64], strides = [1, 1]} : vector<2x192xf32> to vector<2x64xf32>
    %121 = vector.extract_strided_slice %119 {offsets = [0, 64], sizes = [2, 64], strides = [1, 1]} : vector<2x192xf32> to vector<2x64xf32>
    %122 = vector.extract_strided_slice %119 {offsets = [0, 128], sizes = [2, 64], strides = [1, 1]} : vector<2x192xf32> to vector<2x64xf32>
    %123 = vector.extract_strided_slice %113 {offsets = [0, 192], sizes = [2, 64], strides = [1, 1]} : vector<2x256xf32> to vector<2x64xf32>
    %124 = math.tanh %123 : vector<2x64xf32>
    %125 = arith.mulf %121, %88 : vector<2x64xf32>
    %126 = arith.mulf %120, %124 : vector<2x64xf32>
    %127 = arith.addf %125, %126 : vector<2x64xf32>
    %128 = math.tanh %127 : vector<2x64xf32>
    %129 = arith.mulf %122, %128 : vector<2x64xf32>
    %130 = vector.extract_strided_slice %5 {offsets = [6, 0], sizes = [2, 256], strides = [1, 1]} : vector<16x256xf32> to vector<2x256xf32>
    %cst_29 = arith.constant dense<0.000000e+00> : vector<2x256xf32>
    %131 = tpu.matmul %109, %6, %cst_29 {dimension_numbers = #tpu.dot_dimension_numbers<[1], [0], [0], [1], [0, 0, 1, 1], [], []>} : vector<2x64xf32>, vector<64x256xf32>, vector<2x256xf32> -> vector<2x256xf32>
    %132 = arith.addf %130, %131 : vector<2x256xf32>
    %133 = vector.extract_strided_slice %132 {offsets = [0, 0], sizes = [2, 192], strides = [1, 1]} : vector<2x256xf32> to vector<2x192xf32>
    %134 = arith.negf %133 : vector<2x192xf32>
    %135 = math.exp %134 : vector<2x192xf32>
    %cst_30 = arith.constant 1.000000e+00 : f32
    %136 = vector.broadcast %cst_30 : f32 to vector<2x192xf32>
    %137 = arith.addf %136, %135 : vector<2x192xf32>
    %138 = arith.divf %136, %137 : vector<2x192xf32>
    %139 = vector.extract_strided_slice %138 {offsets = [0, 0], sizes = [2, 64], strides = [1, 1]} : vector<2x192xf32> to vector<2x64xf32>
    %140 = vector.extract_strided_slice %138 {offsets = [0, 64], sizes = [2, 64], strides = [1, 1]} : vector<2x192xf32> to vector<2x64xf32>
    %141 = vector.extract_strided_slice %138 {offsets = [0, 128], sizes = [2, 64], strides = [1, 1]} : vector<2x192xf32> to vector<2x64xf32>
    %142 = vector.extract_strided_slice %132 {offsets = [0, 192], sizes = [2, 64], strides = [1, 1]} : vector<2x256xf32> to vector<2x64xf32>
    %143 = math.tanh %142 : vector<2x64xf32>
    %144 = arith.mulf %140, %107 : vector<2x64xf32>
    %145 = arith.mulf %139, %143 : vector<2x64xf32>
    %146 = arith.addf %144, %145 : vector<2x64xf32>
    %147 = math.tanh %146 : vector<2x64xf32>
    %148 = arith.mulf %141, %147 : vector<2x64xf32>
    %cst_31 = arith.constant dense<0.000000e+00> : vector<2x256xf32>
    %149 = tpu.matmul %148, %7, %cst_31 {dimension_numbers = #tpu.dot_dimension_numbers<[1], [0], [0], [1], [0, 0, 1, 1], [], []>} : vector<2x64xf32>, vector<64x256xf32>, vector<2x256xf32> -> vector<2x256xf32>
    %150 = arith.addf %11, %149 : vector<2x256xf32>
    %cst_32 = arith.constant dense<0.000000e+00> : vector<2x256xf32>
    %151 = tpu.matmul %129, %8, %cst_32 {dimension_numbers = #tpu.dot_dimension_numbers<[1], [0], [0], [1], [0, 0, 1, 1], [], []>} : vector<2x64xf32>, vector<64x256xf32>, vector<2x256xf32> -> vector<2x256xf32>
    %152 = arith.addf %150, %151 : vector<2x256xf32>
    %153 = vector.extract_strided_slice %152 {offsets = [0, 0], sizes = [2, 192], strides = [1, 1]} : vector<2x256xf32> to vector<2x192xf32>
    %154 = arith.negf %153 : vector<2x192xf32>
    %155 = math.exp %154 : vector<2x192xf32>
    %cst_33 = arith.constant 1.000000e+00 : f32
    %156 = vector.broadcast %cst_33 : f32 to vector<2x192xf32>
    %157 = arith.addf %156, %155 : vector<2x192xf32>
    %158 = arith.divf %156, %157 : vector<2x192xf32>
    %159 = vector.extract_strided_slice %158 {offsets = [0, 0], sizes = [2, 64], strides = [1, 1]} : vector<2x192xf32> to vector<2x64xf32>
    %160 = vector.extract_strided_slice %158 {offsets = [0, 64], sizes = [2, 64], strides = [1, 1]} : vector<2x192xf32> to vector<2x64xf32>
    %161 = vector.extract_strided_slice %158 {offsets = [0, 128], sizes = [2, 64], strides = [1, 1]} : vector<2x192xf32> to vector<2x64xf32>
    %162 = vector.extract_strided_slice %152 {offsets = [0, 192], sizes = [2, 64], strides = [1, 1]} : vector<2x256xf32> to vector<2x64xf32>
    %163 = math.tanh %162 : vector<2x64xf32>
    %164 = arith.mulf %160, %127 : vector<2x64xf32>
    %165 = arith.mulf %159, %163 : vector<2x64xf32>
    %166 = arith.addf %164, %165 : vector<2x64xf32>
    %167 = math.tanh %166 : vector<2x64xf32>
    %168 = arith.mulf %161, %167 : vector<2x64xf32>
    %169 = vector.extract_strided_slice %5 {offsets = [8, 0], sizes = [2, 256], strides = [1, 1]} : vector<16x256xf32> to vector<2x256xf32>
    %cst_34 = arith.constant dense<0.000000e+00> : vector<2x256xf32>
    %170 = tpu.matmul %148, %6, %cst_34 {dimension_numbers = #tpu.dot_dimension_numbers<[1], [0], [0], [1], [0, 0, 1, 1], [], []>} : vector<2x64xf32>, vector<64x256xf32>, vector<2x256xf32> -> vector<2x256xf32>
    %171 = arith.addf %169, %170 : vector<2x256xf32>
    %172 = vector.extract_strided_slice %171 {offsets = [0, 0], sizes = [2, 192], strides = [1, 1]} : vector<2x256xf32> to vector<2x192xf32>
    %173 = arith.negf %172 : vector<2x192xf32>
    %174 = math.exp %173 : vector<2x192xf32>
    %cst_35 = arith.constant 1.000000e+00 : f32
    %175 = vector.broadcast %cst_35 : f32 to vector<2x192xf32>
    %176 = arith.addf %175, %174 : vector<2x192xf32>
    %177 = arith.divf %175, %176 : vector<2x192xf32>
    %178 = vector.extract_strided_slice %177 {offsets = [0, 0], sizes = [2, 64], strides = [1, 1]} : vector<2x192xf32> to vector<2x64xf32>
    %179 = vector.extract_strided_slice %177 {offsets = [0, 64], sizes = [2, 64], strides = [1, 1]} : vector<2x192xf32> to vector<2x64xf32>
    %180 = vector.extract_strided_slice %177 {offsets = [0, 128], sizes = [2, 64], strides = [1, 1]} : vector<2x192xf32> to vector<2x64xf32>
    %181 = vector.extract_strided_slice %171 {offsets = [0, 192], sizes = [2, 64], strides = [1, 1]} : vector<2x256xf32> to vector<2x64xf32>
    %182 = math.tanh %181 : vector<2x64xf32>
    %183 = arith.mulf %179, %146 : vector<2x64xf32>
    %184 = arith.mulf %178, %182 : vector<2x64xf32>
    %185 = arith.addf %183, %184 : vector<2x64xf32>
    %186 = math.tanh %185 : vector<2x64xf32>
    %187 = arith.mulf %180, %186 : vector<2x64xf32>
    %cst_36 = arith.constant dense<0.000000e+00> : vector<2x256xf32>
    %188 = tpu.matmul %187, %7, %cst_36 {dimension_numbers = #tpu.dot_dimension_numbers<[1], [0], [0], [1], [0, 0, 1, 1], [], []>} : vector<2x64xf32>, vector<64x256xf32>, vector<2x256xf32> -> vector<2x256xf32>
    %189 = arith.addf %11, %188 : vector<2x256xf32>
    %cst_37 = arith.constant dense<0.000000e+00> : vector<2x256xf32>
    %190 = tpu.matmul %168, %8, %cst_37 {dimension_numbers = #tpu.dot_dimension_numbers<[1], [0], [0], [1], [0, 0, 1, 1], [], []>} : vector<2x64xf32>, vector<64x256xf32>, vector<2x256xf32> -> vector<2x256xf32>
    %191 = arith.addf %189, %190 : vector<2x256xf32>
    %192 = vector.extract_strided_slice %191 {offsets = [0, 0], sizes = [2, 192], strides = [1, 1]} : vector<2x256xf32> to vector<2x192xf32>
    %193 = arith.negf %192 : vector<2x192xf32>
    %194 = math.exp %193 : vector<2x192xf32>
    %cst_38 = arith.constant 1.000000e+00 : f32
    %195 = vector.broadcast %cst_38 : f32 to vector<2x192xf32>
    %196 = arith.addf %195, %194 : vector<2x192xf32>
    %197 = arith.divf %195, %196 : vector<2x192xf32>
    %198 = vector.extract_strided_slice %197 {offsets = [0, 0], sizes = [2, 64], strides = [1, 1]} : vector<2x192xf32> to vector<2x64xf32>
    %199 = vector.extract_strided_slice %197 {offsets = [0, 64], sizes = [2, 64], strides = [1, 1]} : vector<2x192xf32> to vector<2x64xf32>
    %200 = vector.extract_strided_slice %197 {offsets = [0, 128], sizes = [2, 64], strides = [1, 1]} : vector<2x192xf32> to vector<2x64xf32>
    %201 = vector.extract_strided_slice %191 {offsets = [0, 192], sizes = [2, 64], strides = [1, 1]} : vector<2x256xf32> to vector<2x64xf32>
    %202 = math.tanh %201 : vector<2x64xf32>
    %203 = arith.mulf %199, %166 : vector<2x64xf32>
    %204 = arith.mulf %198, %202 : vector<2x64xf32>
    %205 = arith.addf %203, %204 : vector<2x64xf32>
    %206 = math.tanh %205 : vector<2x64xf32>
    %207 = arith.mulf %200, %206 : vector<2x64xf32>
    %208 = vector.extract_strided_slice %5 {offsets = [10, 0], sizes = [2, 256], strides = [1, 1]} : vector<16x256xf32> to vector<2x256xf32>
    %cst_39 = arith.constant dense<0.000000e+00> : vector<2x256xf32>
    %209 = tpu.matmul %187, %6, %cst_39 {dimension_numbers = #tpu.dot_dimension_numbers<[1], [0], [0], [1], [0, 0, 1, 1], [], []>} : vector<2x64xf32>, vector<64x256xf32>, vector<2x256xf32> -> vector<2x256xf32>
    %210 = arith.addf %208, %209 : vector<2x256xf32>
    %211 = vector.extract_strided_slice %210 {offsets = [0, 0], sizes = [2, 192], strides = [1, 1]} : vector<2x256xf32> to vector<2x192xf32>
    %212 = arith.negf %211 : vector<2x192xf32>
    %213 = math.exp %212 : vector<2x192xf32>
    %cst_40 = arith.constant 1.000000e+00 : f32
    %214 = vector.broadcast %cst_40 : f32 to vector<2x192xf32>
    %215 = arith.addf %214, %213 : vector<2x192xf32>
    %216 = arith.divf %214, %215 : vector<2x192xf32>
    %217 = vector.extract_strided_slice %216 {offsets = [0, 0], sizes = [2, 64], strides = [1, 1]} : vector<2x192xf32> to vector<2x64xf32>
    %218 = vector.extract_strided_slice %216 {offsets = [0, 64], sizes = [2, 64], strides = [1, 1]} : vector<2x192xf32> to vector<2x64xf32>
    %219 = vector.extract_strided_slice %216 {offsets = [0, 128], sizes = [2, 64], strides = [1, 1]} : vector<2x192xf32> to vector<2x64xf32>
    %220 = vector.extract_strided_slice %210 {offsets = [0, 192], sizes = [2, 64], strides = [1, 1]} : vector<2x256xf32> to vector<2x64xf32>
    %221 = math.tanh %220 : vector<2x64xf32>
    %222 = arith.mulf %218, %185 : vector<2x64xf32>
    %223 = arith.mulf %217, %221 : vector<2x64xf32>
    %224 = arith.addf %222, %223 : vector<2x64xf32>
    %225 = math.tanh %224 : vector<2x64xf32>
    %226 = arith.mulf %219, %225 : vector<2x64xf32>
    %cst_41 = arith.constant dense<0.000000e+00> : vector<2x256xf32>
    %227 = tpu.matmul %226, %7, %cst_41 {dimension_numbers = #tpu.dot_dimension_numbers<[1], [0], [0], [1], [0, 0, 1, 1], [], []>} : vector<2x64xf32>, vector<64x256xf32>, vector<2x256xf32> -> vector<2x256xf32>
    %228 = arith.addf %11, %227 : vector<2x256xf32>
    %cst_42 = arith.constant dense<0.000000e+00> : vector<2x256xf32>
    %229 = tpu.matmul %207, %8, %cst_42 {dimension_numbers = #tpu.dot_dimension_numbers<[1], [0], [0], [1], [0, 0, 1, 1], [], []>} : vector<2x64xf32>, vector<64x256xf32>, vector<2x256xf32> -> vector<2x256xf32>
    %230 = arith.addf %228, %229 : vector<2x256xf32>
    %231 = vector.extract_strided_slice %230 {offsets = [0, 0], sizes = [2, 192], strides = [1, 1]} : vector<2x256xf32> to vector<2x192xf32>
    %232 = arith.negf %231 : vector<2x192xf32>
    %233 = math.exp %232 : vector<2x192xf32>
    %cst_43 = arith.constant 1.000000e+00 : f32
    %234 = vector.broadcast %cst_43 : f32 to vector<2x192xf32>
    %235 = arith.addf %234, %233 : vector<2x192xf32>
    %236 = arith.divf %234, %235 : vector<2x192xf32>
    %237 = vector.extract_strided_slice %236 {offsets = [0, 0], sizes = [2, 64], strides = [1, 1]} : vector<2x192xf32> to vector<2x64xf32>
    %238 = vector.extract_strided_slice %236 {offsets = [0, 64], sizes = [2, 64], strides = [1, 1]} : vector<2x192xf32> to vector<2x64xf32>
    %239 = vector.extract_strided_slice %236 {offsets = [0, 128], sizes = [2, 64], strides = [1, 1]} : vector<2x192xf32> to vector<2x64xf32>
    %240 = vector.extract_strided_slice %230 {offsets = [0, 192], sizes = [2, 64], strides = [1, 1]} : vector<2x256xf32> to vector<2x64xf32>
    %241 = math.tanh %240 : vector<2x64xf32>
    %242 = arith.mulf %238, %205 : vector<2x64xf32>
    %243 = arith.mulf %237, %241 : vector<2x64xf32>
    %244 = arith.addf %242, %243 : vector<2x64xf32>
    %245 = math.tanh %244 : vector<2x64xf32>
    %246 = arith.mulf %239, %245 : vector<2x64xf32>
    %247 = vector.extract_strided_slice %5 {offsets = [12, 0], sizes = [2, 256], strides = [1, 1]} : vector<16x256xf32> to vector<2x256xf32>
    %cst_44 = arith.constant dense<0.000000e+00> : vector<2x256xf32>
    %248 = tpu.matmul %226, %6, %cst_44 {dimension_numbers = #tpu.dot_dimension_numbers<[1], [0], [0], [1], [0, 0, 1, 1], [], []>} : vector<2x64xf32>, vector<64x256xf32>, vector<2x256xf32> -> vector<2x256xf32>
    %249 = arith.addf %247, %248 : vector<2x256xf32>
    %250 = vector.extract_strided_slice %249 {offsets = [0, 0], sizes = [2, 192], strides = [1, 1]} : vector<2x256xf32> to vector<2x192xf32>
    %251 = arith.negf %250 : vector<2x192xf32>
    %252 = math.exp %251 : vector<2x192xf32>
    %cst_45 = arith.constant 1.000000e+00 : f32
    %253 = vector.broadcast %cst_45 : f32 to vector<2x192xf32>
    %254 = arith.addf %253, %252 : vector<2x192xf32>
    %255 = arith.divf %253, %254 : vector<2x192xf32>
    %256 = vector.extract_strided_slice %255 {offsets = [0, 0], sizes = [2, 64], strides = [1, 1]} : vector<2x192xf32> to vector<2x64xf32>
    %257 = vector.extract_strided_slice %255 {offsets = [0, 64], sizes = [2, 64], strides = [1, 1]} : vector<2x192xf32> to vector<2x64xf32>
    %258 = vector.extract_strided_slice %255 {offsets = [0, 128], sizes = [2, 64], strides = [1, 1]} : vector<2x192xf32> to vector<2x64xf32>
    %259 = vector.extract_strided_slice %249 {offsets = [0, 192], sizes = [2, 64], strides = [1, 1]} : vector<2x256xf32> to vector<2x64xf32>
    %260 = math.tanh %259 : vector<2x64xf32>
    %261 = arith.mulf %257, %224 : vector<2x64xf32>
    %262 = arith.mulf %256, %260 : vector<2x64xf32>
    %263 = arith.addf %261, %262 : vector<2x64xf32>
    %264 = math.tanh %263 : vector<2x64xf32>
    %265 = arith.mulf %258, %264 : vector<2x64xf32>
    %cst_46 = arith.constant dense<0.000000e+00> : vector<2x256xf32>
    %266 = tpu.matmul %265, %7, %cst_46 {dimension_numbers = #tpu.dot_dimension_numbers<[1], [0], [0], [1], [0, 0, 1, 1], [], []>} : vector<2x64xf32>, vector<64x256xf32>, vector<2x256xf32> -> vector<2x256xf32>
    %267 = arith.addf %11, %266 : vector<2x256xf32>
    %cst_47 = arith.constant dense<0.000000e+00> : vector<2x256xf32>
    %268 = tpu.matmul %246, %8, %cst_47 {dimension_numbers = #tpu.dot_dimension_numbers<[1], [0], [0], [1], [0, 0, 1, 1], [], []>} : vector<2x64xf32>, vector<64x256xf32>, vector<2x256xf32> -> vector<2x256xf32>
    %269 = arith.addf %267, %268 : vector<2x256xf32>
    %270 = vector.extract_strided_slice %269 {offsets = [0, 0], sizes = [2, 192], strides = [1, 1]} : vector<2x256xf32> to vector<2x192xf32>
    %271 = arith.negf %270 : vector<2x192xf32>
    %272 = math.exp %271 : vector<2x192xf32>
    %cst_48 = arith.constant 1.000000e+00 : f32
    %273 = vector.broadcast %cst_48 : f32 to vector<2x192xf32>
    %274 = arith.addf %273, %272 : vector<2x192xf32>
    %275 = arith.divf %273, %274 : vector<2x192xf32>
    %276 = vector.extract_strided_slice %275 {offsets = [0, 0], sizes = [2, 64], strides = [1, 1]} : vector<2x192xf32> to vector<2x64xf32>
    %277 = vector.extract_strided_slice %275 {offsets = [0, 64], sizes = [2, 64], strides = [1, 1]} : vector<2x192xf32> to vector<2x64xf32>
    %278 = vector.extract_strided_slice %275 {offsets = [0, 128], sizes = [2, 64], strides = [1, 1]} : vector<2x192xf32> to vector<2x64xf32>
    %279 = vector.extract_strided_slice %269 {offsets = [0, 192], sizes = [2, 64], strides = [1, 1]} : vector<2x256xf32> to vector<2x64xf32>
    %280 = math.tanh %279 : vector<2x64xf32>
    %281 = arith.mulf %277, %244 : vector<2x64xf32>
    %282 = arith.mulf %276, %280 : vector<2x64xf32>
    %283 = arith.addf %281, %282 : vector<2x64xf32>
    %284 = math.tanh %283 : vector<2x64xf32>
    %285 = arith.mulf %278, %284 : vector<2x64xf32>
    %286 = vector.extract_strided_slice %5 {offsets = [14, 0], sizes = [2, 256], strides = [1, 1]} : vector<16x256xf32> to vector<2x256xf32>
    %cst_49 = arith.constant dense<0.000000e+00> : vector<2x256xf32>
    %287 = tpu.matmul %265, %6, %cst_49 {dimension_numbers = #tpu.dot_dimension_numbers<[1], [0], [0], [1], [0, 0, 1, 1], [], []>} : vector<2x64xf32>, vector<64x256xf32>, vector<2x256xf32> -> vector<2x256xf32>
    %288 = arith.addf %286, %287 : vector<2x256xf32>
    %289 = vector.extract_strided_slice %288 {offsets = [0, 0], sizes = [2, 192], strides = [1, 1]} : vector<2x256xf32> to vector<2x192xf32>
    %290 = arith.negf %289 : vector<2x192xf32>
    %291 = math.exp %290 : vector<2x192xf32>
    %cst_50 = arith.constant 1.000000e+00 : f32
    %292 = vector.broadcast %cst_50 : f32 to vector<2x192xf32>
    %293 = arith.addf %292, %291 : vector<2x192xf32>
    %294 = arith.divf %292, %293 : vector<2x192xf32>
    %295 = vector.extract_strided_slice %294 {offsets = [0, 0], sizes = [2, 64], strides = [1, 1]} : vector<2x192xf32> to vector<2x64xf32>
    %296 = vector.extract_strided_slice %294 {offsets = [0, 64], sizes = [2, 64], strides = [1, 1]} : vector<2x192xf32> to vector<2x64xf32>
    %297 = vector.extract_strided_slice %294 {offsets = [0, 128], sizes = [2, 64], strides = [1, 1]} : vector<2x192xf32> to vector<2x64xf32>
    %298 = vector.extract_strided_slice %288 {offsets = [0, 192], sizes = [2, 64], strides = [1, 1]} : vector<2x256xf32> to vector<2x64xf32>
    %299 = math.tanh %298 : vector<2x64xf32>
    %300 = arith.mulf %296, %263 : vector<2x64xf32>
    %301 = arith.mulf %295, %299 : vector<2x64xf32>
    %302 = arith.addf %300, %301 : vector<2x64xf32>
    %303 = math.tanh %302 : vector<2x64xf32>
    %304 = arith.mulf %297, %303 : vector<2x64xf32>
    %cst_51 = arith.constant dense<0.000000e+00> : vector<2x256xf32>
    %305 = tpu.matmul %304, %7, %cst_51 {dimension_numbers = #tpu.dot_dimension_numbers<[1], [0], [0], [1], [0, 0, 1, 1], [], []>} : vector<2x64xf32>, vector<64x256xf32>, vector<2x256xf32> -> vector<2x256xf32>
    %306 = arith.addf %11, %305 : vector<2x256xf32>
    %cst_52 = arith.constant dense<0.000000e+00> : vector<2x256xf32>
    %307 = tpu.matmul %285, %8, %cst_52 {dimension_numbers = #tpu.dot_dimension_numbers<[1], [0], [0], [1], [0, 0, 1, 1], [], []>} : vector<2x64xf32>, vector<64x256xf32>, vector<2x256xf32> -> vector<2x256xf32>
    %308 = arith.addf %306, %307 : vector<2x256xf32>
    %309 = vector.extract_strided_slice %308 {offsets = [0, 0], sizes = [2, 192], strides = [1, 1]} : vector<2x256xf32> to vector<2x192xf32>
    %310 = arith.negf %309 : vector<2x192xf32>
    %311 = math.exp %310 : vector<2x192xf32>
    %cst_53 = arith.constant 1.000000e+00 : f32
    %312 = vector.broadcast %cst_53 : f32 to vector<2x192xf32>
    %313 = arith.addf %312, %311 : vector<2x192xf32>
    %314 = arith.divf %312, %313 : vector<2x192xf32>
    %315 = vector.extract_strided_slice %314 {offsets = [0, 0], sizes = [2, 64], strides = [1, 1]} : vector<2x192xf32> to vector<2x64xf32>
    %316 = vector.extract_strided_slice %314 {offsets = [0, 64], sizes = [2, 64], strides = [1, 1]} : vector<2x192xf32> to vector<2x64xf32>
    %317 = vector.extract_strided_slice %314 {offsets = [0, 128], sizes = [2, 64], strides = [1, 1]} : vector<2x192xf32> to vector<2x64xf32>
    %318 = vector.extract_strided_slice %308 {offsets = [0, 192], sizes = [2, 64], strides = [1, 1]} : vector<2x256xf32> to vector<2x64xf32>
    %319 = math.tanh %318 : vector<2x64xf32>
    %320 = arith.mulf %316, %283 : vector<2x64xf32>
    %321 = arith.mulf %315, %319 : vector<2x64xf32>
    %322 = arith.addf %320, %321 : vector<2x64xf32>
    %323 = math.tanh %322 : vector<2x64xf32>
    %324 = arith.mulf %317, %323 : vector<2x64xf32>
    %325 = vector.extract_strided_slice %51 {offsets = [0, 0], sizes = [2, 32], strides = [1, 1]} : vector<2x64xf32> to vector<2x32xf32>
    %326 = vector.extract_strided_slice %324 {offsets = [0, 32], sizes = [2, 32], strides = [1, 1]} : vector<2x64xf32> to vector<2x32xf32>
    %327 = tpu.concatenate %325, %326 in 1 : vector<2x32xf32>, vector<2x32xf32> -> vector<2x64xf32>
    %328 = vector.extract_strided_slice %90 {offsets = [0, 0], sizes = [2, 32], strides = [1, 1]} : vector<2x64xf32> to vector<2x32xf32>
    %329 = vector.extract_strided_slice %285 {offsets = [0, 32], sizes = [2, 32], strides = [1, 1]} : vector<2x64xf32> to vector<2x32xf32>
    %330 = tpu.concatenate %328, %329 in 1 : vector<2x32xf32>, vector<2x32xf32> -> vector<2x64xf32>
    %331 = vector.extract_strided_slice %129 {offsets = [0, 0], sizes = [2, 32], strides = [1, 1]} : vector<2x64xf32> to vector<2x32xf32>
    %332 = vector.extract_strided_slice %246 {offsets = [0, 32], sizes = [2, 32], strides = [1, 1]} : vector<2x64xf32> to vector<2x32xf32>
    %333 = tpu.concatenate %331, %332 in 1 : vector<2x32xf32>, vector<2x32xf32> -> vector<2x64xf32>
    %334 = vector.extract_strided_slice %168 {offsets = [0, 0], sizes = [2, 32], strides = [1, 1]} : vector<2x64xf32> to vector<2x32xf32>
    %335 = vector.extract_strided_slice %207 {offsets = [0, 32], sizes = [2, 32], strides = [1, 1]} : vector<2x64xf32> to vector<2x32xf32>
    %336 = tpu.concatenate %334, %335 in 1 : vector<2x32xf32>, vector<2x32xf32> -> vector<2x64xf32>
    %337 = vector.extract_strided_slice %207 {offsets = [0, 0], sizes = [2, 32], strides = [1, 1]} : vector<2x64xf32> to vector<2x32xf32>
    %338 = vector.extract_strided_slice %168 {offsets = [0, 32], sizes = [2, 32], strides = [1, 1]} : vector<2x64xf32> to vector<2x32xf32>
    %339 = tpu.concatenate %337, %338 in 1 : vector<2x32xf32>, vector<2x32xf32> -> vector<2x64xf32>
    %340 = vector.extract_strided_slice %246 {offsets = [0, 0], sizes = [2, 32], strides = [1, 1]} : vector<2x64xf32> to vector<2x32xf32>
    %341 = vector.extract_strided_slice %129 {offsets = [0, 32], sizes = [2, 32], strides = [1, 1]} : vector<2x64xf32> to vector<2x32xf32>
    %342 = tpu.concatenate %340, %341 in 1 : vector<2x32xf32>, vector<2x32xf32> -> vector<2x64xf32>
    %343 = vector.extract_strided_slice %285 {offsets = [0, 0], sizes = [2, 32], strides = [1, 1]} : vector<2x64xf32> to vector<2x32xf32>
    %344 = vector.extract_strided_slice %90 {offsets = [0, 32], sizes = [2, 32], strides = [1, 1]} : vector<2x64xf32> to vector<2x32xf32>
    %345 = tpu.concatenate %343, %344 in 1 : vector<2x32xf32>, vector<2x32xf32> -> vector<2x64xf32>
    %346 = vector.extract_strided_slice %324 {offsets = [0, 0], sizes = [2, 32], strides = [1, 1]} : vector<2x64xf32> to vector<2x32xf32>
    %347 = vector.extract_strided_slice %51 {offsets = [0, 32], sizes = [2, 32], strides = [1, 1]} : vector<2x64xf32> to vector<2x32xf32>
    %348 = tpu.concatenate %346, %347 in 1 : vector<2x32xf32>, vector<2x32xf32> -> vector<2x64xf32>
    %349 = tpu.concatenate %327, %330, %333, %336, %339, %342, %345, %348 in 0 : vector<2x64xf32>, vector<2x64xf32>, vector<2x64xf32>, vector<2x64xf32>, vector<2x64xf32>, vector<2x64xf32>, vector<2x64xf32>, vector<2x64xf32> -> vector<16x64xf32>
    %c0_54 = arith.constant 0 : index
    %c0_55 = arith.constant 0 : index
    %350 = vector.load %arg7[%c0_54, %c0_55] : memref<64x128xf32, #tpu.memory_space<vmem>>, vector<64x128xf32>
    %cst_56 = arith.constant dense<0.000000e+00> : vector<16x128xf32>
    %351 = tpu.matmul %349, %350, %cst_56 {dimension_numbers = #tpu.dot_dimension_numbers<[1], [0], [0], [1], [0, 0, 1, 1], [], []>} : vector<16x64xf32>, vector<64x128xf32>, vector<16x128xf32> -> vector<16x128xf32>
    %c0_57 = arith.constant 0 : index
    %c0_58 = arith.constant 0 : index
    %352 = vector.load %arg8[%c0_57, %c0_58] : memref<1x128xf32, #tpu.memory_space<vmem>>, vector<1x128xf32>
    %353 = vector.broadcast %352 : vector<1x128xf32> to vector<16x128xf32>
    %354 = arith.addf %351, %353 : vector<16x128xf32>
    %c0_59 = arith.constant 0 : index
    %c0_60 = arith.constant 0 : index
    %355 = vector.load %arg9[%c0_59, %c0_60] : memref<16x128xf32, #tpu.memory_space<vmem>>, vector<16x128xf32>
    tpu.vector_store %arg9[%c0_59, %c0_60], %354 {strides = array<i32>} : memref<16x128xf32, #tpu.memory_space<vmem>>, vector<16x128xf32>,
    return
  }
}

</mosaic_0001>

<bundles_post_ra>
// kernel: tpu_custom_call.1
= control target key start
LH: loop header
LB: loop body
LE: loop exit
PB: predicated region body
PF: predicated region fallthrough
CT: control target
= control target key end

     0   :  { %14 = vsyncpa [#allocation3], 0  ;;  %s4388_s0 = inlined_call_operand.hbm [shape: f32[16,64], index: 0, kind: input, shape index: {}]   ;;  %s4389_s1 = inlined_call_operand.hbm [shape: f32[64,256], index: 1, kind: input, shape index: {}]   ;;  %s4390_s2 = inlined_call_operand.vmem [shape: f32[1,256], index: 2, kind: input, shape index: {}]   ;;  %s4391_s3 = inlined_call_operand.hbm [shape: f32[64,256], index: 3, kind: input, shape index: {}]   ;;  %s4392_s4 = inlined_call_operand.hbm [shape: f32[64,256], index: 4, kind: input, shape index: {}]   ;;  %s4393_s5 = inlined_call_operand.hbm [shape: f32[64,256], index: 5, kind: input, shape index: {}]   ;;  %s4394_s6 = inlined_call_operand.vmem [shape: f32[1,256], index: 6, kind: input, shape index: {}]   ;;  %s4395_s7 = inlined_call_operand.hbm [shape: f32[64,128], index: 7, kind: input, shape index: {}]   ;;  %s4396_s8 = inlined_call_operand.vmem [shape: f32[1,128], index: 8, kind: input, shape index: {}]   ;;  %s4397_s9 = inlined_call_operand.hbm [shape: f32[16,128], index: 9, kind: output, shape index: {}]  }
   0x1   :  { %15 = vsyncpa [#allocation6], 0 }
   0x2   :  { %16 = vsyncpa [#allocation9], 0 }
   0x3   :  { %17 = vsyncpa [#allocation12], 0 }
   0x4   :  { %18 = vsyncpa [#allocation4], 0  ;;  %s3691_s30 = smov [#allocation5]   ;;  %s3527_s13 = scalar_lea.hbm %s4389_s1, 2048 }
   0x5   :  { %s36_s10 = sshll.u32 %s3691_s30, 4  ;;  %p3528_p0 = scmp.ne.s32.totalorder %s4389_s1, %s3527_s13  ;;  %s37_s10 = int_to_ptr.vmem [resolvable:$true] %s36_s10 }
   0x6   :  { %p3531_p1 = scmp.lt.u32.totalorder %s3527_s13, %s4389_s1 }
   0x8   :  { %p3533_p2 = pnand %p3531_p1, %p3528_p0 }
   0xa   :  { %3536 = shalt.err (!%p3533_p2)
}
   0xb   :  { %s3537_s18 = scalar_lea.vmem %s37_s10, 2048  ;;  %p3542_p4 = scmp.lt.s32.totalorder %s37_s10, %s37_s10 }
   0xc   :  { %p3538_p3 = scmp.ne.s32.totalorder %s37_s10, %s3537_s18  ;;  %p3543_p5 = scmp.lt.s32.totalorder %s3537_s18, %s3537_s18 }
   0xe   :  { %p3544_p6 = por %p3543_p5, %p3542_p4 }
  0x10   :  { %p3545_p7 = pnand %p3544_p6, %p3538_p3 }
  0x12   :  { %3548 = shalt.err (!%p3545_p7)
}
  0x13   :  { %s3692_s19 = smov 256   ;;  %s3693_s20 = smov 16  }
  0x14   :  { %42 = dma.hbm_to_vmem [thread:$0]  %s4389_s1, 2048, %s37_s10, [#allocation6], %s3692_s19, %s3692_s19, %s3693_s20  }
  0x15   :  { %s3694_s23 = smov [#allocation8]   ;;  %s3695_s25 = smov [#allocation2]  }
  0x16   :  { %s62_s24 = sshll.u32 %s3694_s23, 4  ;;  %s24_s26 = sshll.u32 %s3695_s25, 4  ;;  %s63_s24 = int_to_ptr.vmem [resolvable:$true] %s62_s24  ;;  %s25_s26 = int_to_ptr.vmem [resolvable:$true] %s24_s26 }
  0x17   :  { %s3549_s29 = scalar_lea.hbm %s4392_s4, 2048 }
  0x18   :  { %p3550_p8 = scmp.ne.s32.totalorder %s4392_s4, %s3549_s29  ;;  %p3553_p9 = scmp.lt.u32.totalorder %s3549_s29, %s4392_s4 }
  0x1a   :  { %p3555_p10 = pnand %p3553_p9, %p3550_p8 }
  0x1c   :  { %3558 = shalt.err (!%p3555_p10)
}
  0x1d   :  { %s3559_s1 = scalar_lea.vmem %s63_s24, 2048  ;;  %p3564_p12 = scmp.lt.s32.totalorder %s63_s24, %s63_s24 }
  0x1e   :  { %p3560_p11 = scmp.ne.s32.totalorder %s63_s24, %s3559_s1  ;;  %p3565_p13 = scmp.lt.s32.totalorder %s3559_s1, %s3559_s1 }
  0x20   :  { %p3566_p0 = por %p3565_p13, %p3564_p12 }
  0x22   :  { %p3567_p1 = pnand %p3566_p0, %p3560_p11 }
  0x24   :  { %3570 = shalt.err (!%p3567_p1)
}
  0x25   :  { %68 = dma.hbm_to_vmem [thread:$0]  %s4392_s4, 2048, %s63_s24, [#allocation9], %s3692_s19, %s3692_s19, %s3693_s20  }
  0x26   :  { %s3571_s17 = scalar_lea.hbm %s4388_s0, 256 }
  0x27   :  { %p3572_p2 = scmp.ne.s32.totalorder %s4388_s0, %s3571_s17  ;;  %p3575_p3 = scmp.lt.u32.totalorder %s3571_s17, %s4388_s0 }
  0x29   :  { %p3577_p4 = pnand %p3575_p3, %p3572_p2 }
  0x2b   :  { %3580 = shalt.err (!%p3577_p4)
}
  0x2c   :  { %s3581_s25 = scalar_lea.vmem %s25_s26, 256  ;;  %p3586_p6 = scmp.lt.s32.totalorder %s25_s26, %s25_s26 }
  0x2d   :  { %p3582_p5 = scmp.ne.s32.totalorder %s25_s26, %s3581_s25  ;;  %p3587_p7 = scmp.lt.s32.totalorder %s3581_s25, %s3581_s25 }
  0x2f   :  { %p3588_p8 = por %p3587_p7, %p3586_p6 }
  0x31   :  { %p3589_p9 = pnand %p3588_p8, %p3582_p5 }
  0x33   :  { %3592 = shalt.err (!%p3589_p9)
}
  0x34   :  { %s3696_s4 = smov 128   ;;  %s3697_s24 = smov 8  }
  0x35   :  { %30 = dma.hbm_to_vmem [thread:$0]  %s4388_s0, 256, %s25_s26, [#allocation3], %s3696_s4, %s3696_s4, %s3697_s24  }
  0x36   :  { %s3698_s29 = smov [#allocation7]   ;;  %s3699_s11 = smov [#allocation10]  }
  0x37   :  { %s50_s30 = sshll.u32 %s3698_s29, 4  ;;  %s74_s12 = sshll.u32 %s3699_s11, 4  ;;  %s51_s30 = int_to_ptr.vmem [resolvable:$true] %s50_s30  ;;  %s75_s12 = int_to_ptr.vmem [resolvable:$true] %s74_s12 }
  0x38   :  { %s3593_s10 = scalar_lea.hbm %s4391_s3, 2048 }
  0x39   :  { %p3594_p10 = scmp.ne.s32.totalorder %s4391_s3, %s3593_s10  ;;  %p3597_p11 = scmp.lt.u32.totalorder %s3593_s10, %s4391_s3 }
  0x3b   :  { %p3599_p12 = pnand %p3597_p11, %p3594_p10 }
  0x3d   :  { %3602 = shalt.err (!%p3599_p12)
}
  0x3e   :  { %s3603_s0 = scalar_lea.vmem %s51_s30, 2048  ;;  %p3608_p0 = scmp.lt.s32.totalorder %s51_s30, %s51_s30 }
  0x3f   :  { %p3604_p13 = scmp.ne.s32.totalorder %s51_s30, %s3603_s0  ;;  %p3609_p1 = scmp.lt.s32.totalorder %s3603_s0, %s3603_s0 }
  0x41   :  { %p3610_p2 = por %p3609_p1, %p3608_p0 }
  0x43   :  { %p3611_p3 = pnand %p3610_p2, %p3604_p13 }
  0x45   :  { %3614 = shalt.err (!%p3611_p3)
}
  0x46   :  { %56 = dma.hbm_to_vmem [thread:$0]  %s4391_s3, 2048, %s51_s30, [#allocation6], %s3692_s19, %s3692_s19, %s3693_s20  }
  0x47   :  { %s3615_s23 = scalar_lea.hbm %s4393_s5, 2048 }
  0x48   :  { %p3616_p4 = scmp.ne.s32.totalorder %s4393_s5, %s3615_s23  ;;  %p3619_p5 = scmp.lt.u32.totalorder %s3615_s23, %s4393_s5 }
  0x4a   :  { %p3621_p6 = pnand %p3619_p5, %p3616_p4 }
  0x4c   :  { %3624 = shalt.err (!%p3621_p6)
}
  0x4d   :  { %s3625_s11 = scalar_lea.vmem %s75_s12, 2048  ;;  %p3630_p8 = scmp.lt.s32.totalorder %s75_s12, %s75_s12 }
  0x4e   :  { %p3626_p7 = scmp.ne.s32.totalorder %s75_s12, %s3625_s11  ;;  %p3631_p9 = scmp.lt.s32.totalorder %s3625_s11, %s3625_s11 }
  0x50   :  { %p3632_p10 = por %p3631_p9, %p3630_p8 }
  0x52   :  { %p3633_p11 = pnand %p3632_p10, %p3626_p7 }
  0x54   :  { %3636 = shalt.err (!%p3633_p11)
}
  0x55   :  { %80 = dma.hbm_to_vmem [thread:$0]  %s4393_s5, 2048, %s75_s12, [#allocation9], %s3692_s19, %s3692_s19, %s3693_s20  }
  0x56   :  { %s3700_s13 = smov [#allocation11]   ;;  %s3637_s15 = scalar_lea.hbm %s4395_s7, 1024 }
  0x57   :  { %s88_s1 = sshll.u32 %s3700_s13, 4  ;;  %p3638_p12 = scmp.ne.s32.totalorder %s4395_s7, %s3637_s15  ;;  %s89_s1 = int_to_ptr.vmem [resolvable:$true] %s88_s1 }
  0x58   :  { %p3641_p13 = scmp.lt.u32.totalorder %s3637_s15, %s4395_s7 }
  0x5a   :  { %p3643_p0 = pnand %p3641_p13, %p3638_p12 }
  0x5c   :  { %3646 = shalt.err (!%p3643_p0)
}
  0x5d   :  { %s3647_s18 = scalar_lea.vmem %s89_s1, 1024  ;;  %p3652_p2 = scmp.lt.s32.totalorder %s89_s1, %s89_s1 }
  0x5e   :  { %p3648_p1 = scmp.ne.s32.totalorder %s89_s1, %s3647_s18  ;;  %p3653_p3 = scmp.lt.s32.totalorder %s3647_s18, %s3647_s18 }
  0x60   :  { %p3654_p4 = por %p3653_p3, %p3652_p2 }
  0x62   :  { %p3655_p5 = pnand %p3654_p4, %p3648_p1 }
  0x64   :  { %3658 = shalt.err (!%p3655_p5)
}
  0x65   :  { %94 = dma.hbm_to_vmem [thread:$0]  %s4395_s7, 1024, %s89_s1, [#allocation12], %s3696_s4, %s3696_s4, %s3697_s24  }
  0x66   :  { %3681 = dma.done.wait [#allocation3], 256  }
  0x67   :  { %3682 = vsyncadd [#allocation3], 4294967040 }
  0x68   :  { %3683 = dma.done.wait [#allocation6], 4096  }
  0x69   :  { %3684 = vsyncadd [#allocation6], 4294963200 }
  0x6a   :  { %3685 = dma.done.wait [#allocation9], 4096  }
  0x6b   :  { %3686 = vsyncadd [#allocation9], 4294963200 }
  0x6c   :  { %3687 = dma.done.wait [#allocation12], 1024  }
  0x6d   :  { %3688 = vsyncadd [#allocation12], 4294966272  ;;  %v3701_v0 = vmov 0.0   ;;  %v118_v1 = vld [vmem:[#allocation5 + $0x8] sm:$0xff]  ;;  %v120_v2 = vld [vmem:[#allocation5 + $0x18] sm:$0xff]  ;;  %vm145_vm0 = vcmask 523264   ;;  %v135_v50 = vlaneseq }
  0x6e   :  { %216 = vmatprep.mubr.f32.mxu0 %v3701_v0  ;;  %356 = vmatprep.mubr.f32.mxu1 %v3701_v0  ;;  %v117_v3 = vld [vmem:[#allocation5] sm:$0xff]  ;;  %v2874_v4 = vpack.c.bf16 %v120_v2, %v118_v1  ;;  %v119_v5 = vld [vmem:[#allocation5 + $0x10] sm:$0xff]  ;;  %v230_v6 = vld [vmem:[#allocation7 + $0x8] sm:$0xff]  ;;  %s3702_s12 = smov 64   ;;  %vm2632_vm1 = vcmask 261120   ;;  %vm2659_vm2 = vcmask 1041408  }
  0x6f   :  { %v232_v7 = vld [vmem:[#allocation7 + $0x18] sm:$0xff]  ;;  %v2876_v8 = vpack.c.bf16 %v119_v5, %v117_v3  ;;  %v229_v10 = vld [vmem:[#allocation7] sm:$0xff]  ;;  %v231_v11 = vld [vmem:[#allocation7 + $0x10] sm:$0xff]  ;;  %v3882_v51 = vshrl.u32 %v135_v50, 7  ;;  %vm2661_vm3 = vcmask 1043456   ;;  %vm2663_vm4 = vcmask 1045504  }
  0x70   :  { %v3846_v9 = vpack.c.bf16 %v232_v7, %v230_v6  ;;  %v122_v12 = vld [vmem:[#allocation5 + $0x28] sm:$0xff]  ;;  %2875 = vmatprep.subr.bf16.mxu0 %v2874_v4  ;;  %v3848_v13 = vpack.c.bf16 %v231_v11, %v229_v10  ;;  %v124_v14 = vld [vmem:[#allocation5 + $0x38] sm:$0xff]  ;;  %v121_v15 = vld [vmem:[#allocation5 + $0x20] sm:$0xff]  ;;  %s3703_s23 = smov [#allocation13]  }
  0x71   :  { %v123_v16 = vld [vmem:[#allocation5 + $0x30] sm:$0xff]  ;;  %2877 = vmatpush1.bf16.msra.mxu0 %v2876_v8  ;;  %v2878_v17 = vpack.c.bf16 %v124_v14, %v122_v12  ;;  %v234_v19 = vld [vmem:[#allocation7 + $0x28] sm:$0xff]  ;;  %v236_v20 = vld [vmem:[#allocation7 + $0x38] sm:$0xff]  ;;  %v141_v52 = vsub.s32 1, %v3882_v51  ;;  %v137_v62 = vsub.s32 0, %v3882_v51  ;;  %s2771_s25 = sshll.u32 %s3703_s23, 4  ;;  %s2772_s25 = int_to_ptr.vmem [resolvable:$true] %s2771_s25 }
  0x72   :  { %2891 = vmatprep.subr.bf16.mxu1 %v3846_v9  ;;  %v2880_v18 = vpack.c.bf16 %v123_v16, %v121_v15  ;;  %v233_v21 = vld [vmem:[#allocation7 + $0x20] sm:$0xff]  ;;  %v3852_v22 = vpack.c.bf16 %v236_v20, %v234_v19  ;;  %v235_v23 = vld [vmem:[#allocation7 + $0x30] sm:$0xff]  ;;  %v126_v24 = vld [vmem:[#allocation5 + $0x48] sm:$0xff]  ;;  %s3659_s27 = scalar_lea.vmem %s2772_s25, 256  ;;  %p3664_p7 = scmp.lt.s32.totalorder %s2772_s25, %s2772_s25 }
  0x73   :  { %2893 = vmatpush1.bf16.msra.mxu1 %v3848_v13  ;;  %v128_v25 = vld [vmem:[#allocation5 + $0x58] sm:$0xff]  ;;  %2879 = vmatprep.subr.bf16.mxu0 %v2878_v17  ;;  %v3854_v26 = vpack.c.bf16 %v235_v23, %v233_v21  ;;  %v125_v28 = vld [vmem:[#allocation5 + $0x40] sm:$0xff]  ;;  %v127_v29 = vld [vmem:[#allocation5 + $0x50] sm:$0xff]  ;;  %p3660_p6 = scmp.ne.s32.totalorder %s2772_s25, %s3659_s27  ;;  %p3665_p8 = scmp.lt.s32.totalorder %s3659_s27, %s3659_s27 }
  0x74   :  { %v2882_v27 = vpack.c.bf16 %v128_v25, %v126_v24  ;;  %v238_v30 = vld [vmem:[#allocation7 + $0x48] sm:$0xff]  ;;  %2895 = vmatprep.subr.bf16.mxu1 %v3852_v22  ;;  %v240_v31 = vld [vmem:[#allocation7 + $0x58] sm:$0xff]  ;;  %v237_v32 = vld [vmem:[#allocation7 + $0x40] sm:$0xff]  ;;  %v2884_v34 = vpack.c.bf16 %v127_v29, %v125_v28 }
  0x75   :  { %v239_v33 = vld [vmem:[#allocation7 + $0x50] sm:$0xff]  ;;  %2881 = vmatpush1.bf16.msra.mxu0 %v2880_v18  ;;  %v3857_v35 = vpack.c.bf16 %v240_v31, %v238_v30  ;;  %v130_v36 = vld [vmem:[#allocation5 + $0x68] sm:$0xff]  ;;  %v132_v37 = vld [vmem:[#allocation5 + $0x78] sm:$0xff]  ;;  %p3666_p9 = por %p3665_p8, %p3664_p7 }
  0x76   :  { %v129_v38 = vld [vmem:[#allocation5 + $0x60] sm:$0xff]  ;;  %2883 = vmatprep.subr.bf16.mxu0 %v2882_v27  ;;  %v3860_v39 = vpack.c.bf16 %v239_v33, %v237_v32  ;;  %v2886_v40 = vpack.c.bf16 %v132_v37, %v130_v36  ;;  %v131_v41 = vld [vmem:[#allocation5 + $0x70] sm:$0xff]  ;;  %v242_v42 = vld [vmem:[#allocation7 + $0x68] sm:$0xff] }
  0x77   :  { %2897 = vmatpush1.bf16.msra.mxu1 %v3854_v26  ;;  %v244_v43 = vld [vmem:[#allocation7 + $0x78] sm:$0xff]  ;;  %v241_v45 = vld [vmem:[#allocation7 + $0x60] sm:$0xff]  ;;  %v243_v46 = vld [vmem:[#allocation7 + $0x70] sm:$0xff]  ;;  %v2888_v47 = vpack.c.bf16 %v131_v41, %v129_v38  ;;  %p3667_p10 = pnand %p3666_p9, %p3660_p6 }
  0x78   :  { %2899 = vmatprep.subr.bf16.mxu1 %v3857_v35  ;;  %v3863_v44 = vpack.c.bf16 %v244_v43, %v242_v42  ;;  %v3866_v48 = vpack.c.bf16 %v243_v46, %v241_v45  ;;  %v115_v49 = vld [vmem:[#allocation2] sm:$0xff]  ;;  %v246_v10 = vld [vmem:[#allocation8 + $0x8] sm:$0xff]  ;;  %v248_v11 = vld [vmem:[#allocation8 + $0x18] sm:$0xff] }
  0x79   :  { %2885 = vmatpush1.bf16.msra.mxu0 %v2884_v34  ;;  %v133_v53 = vld [vmem:[%s4390_s2] sm:$0x3]  ;;  %v245_v12 = vld [vmem:[#allocation8] sm:$0xff]  ;;  %v3910_v14 = vpack.c.bf16 %v248_v11, %v246_v10  ;;  %v250_v16 = vld [vmem:[#allocation8 + $0x28] sm:$0xff] }
  0x7a   :  { %2887 = vmatprep.subr.bf16.mxu0 %v2886_v40  ;;  %v3890_v54 = vrot.slane %v133_v53, %v141_v52  ;;  %v3903_v63 = vrot.slane %v133_v53, %v137_v62  ;;  %v247_v15 = vld [vmem:[#allocation8 + $0x10] sm:$0xff]  ;;  %v252_v17 = vld [vmem:[#allocation8 + $0x38] sm:$0xff]  ;;  %v249_v20 = vld [vmem:[#allocation8 + $0x20] sm:$0xff] }
  0x7b   :  { %2901 = vmatpush1.bf16.msra.mxu1 %v3860_v39  ;;  %v3912_v18 = vpack.c.bf16 %v247_v15, %v245_v12  ;;  %v3914_v19 = vpack.c.bf16 %v252_v17, %v250_v16  ;;  %v251_v21 = vld [vmem:[#allocation8 + $0x30] sm:$0xff]  ;;  %v254_v23 = vld [vmem:[#allocation8 + $0x48] sm:$0xff]  ;;  %v256_v24 = vld [vmem:[#allocation8 + $0x58] sm:$0xff] }
  0x7c   :  { %2903 = vmatprep.subr.bf16.mxu1 %v3863_v44  ;;  %v3919_v25 = vpack.c.bf16 %v251_v21, %v249_v20  ;;  %v116_v27 = vld [vmem:[#allocation2 + $0x8] sm:$0xff]  ;;  %v3922_v28 = vpack.c.bf16 %v256_v24, %v254_v23  ;;  %v253_v29 = vld [vmem:[#allocation8 + $0x40] sm:$0xff]  ;;  %v255_v30 = vld [vmem:[#allocation8 + $0x50] sm:$0xff] }
  0x7d   :  { %2889 = vmatpush1.bf16.msra.mxu0 %v2888_v47  ;;  %v258_v31 = vld [vmem:[#allocation8 + $0x68] sm:$0xff]  ;;  %v260_v32 = vld [vmem:[#allocation8 + $0x78] sm:$0xff]  ;;  %v3927_v33 = vpack.c.bf16 %v255_v30, %v253_v29  ;;  %v257_v36 = vld [vmem:[#allocation8 + $0x60] sm:$0xff] }
  0x7e   :  { %2907 = vmatprep.subr.bf16.mxu0 %v3910_v14  ;;  %v3930_v34 = vpack.c.bf16 %v260_v32, %v258_v31  ;;  %v259_v37 = vld [vmem:[#allocation8 + $0x70] sm:$0xff]  ;;  %v262_v41 = vld [vmem:[#allocation10 + $0x8] sm:$0xff]  ;;  %v264_v42 = vld [vmem:[#allocation10 + $0x18] sm:$0xff] }
  0x7f   :  { %2905 = vmatpush1.bf16.msra.mxu1 %v3866_v48  ;;  %v3933_v38 = vpack.c.bf16 %v259_v37, %v257_v36  ;;  %v3937_v45 = vpack.c.bf16 %v264_v42, %v262_v41  ;;  %v272_v10 = vld [vmem:[#allocation10 + $0x58] sm:$0xff]  ;;  %v269_v12 = vld [vmem:[#allocation10 + $0x40] sm:$0xff]  ;;  %v271_v15 = vld [vmem:[#allocation10 + $0x50] sm:$0xff] }
  0x80   :  { %2939 = vmatprep.subr.bf16.mxu1 %v3846_v9  ;;  %2786 = vmatmul.mubr.msk.f32.vlgmr.msra.gmra.mrb[0].mxu0 %vm145_vm0, %v115_v49  ;;  %v274_v16 = vld [vmem:[#allocation10 + $0x68] sm:$0xff]  ;;  %v276_v17 = vld [vmem:[#allocation10 + $0x78] sm:$0xff]  ;;  %v3962_v20 = vpack.c.bf16 %v271_v15, %v269_v12  ;;  %v273_v23 = vld [vmem:[#allocation10 + $0x60] sm:$0xff] }
  0x81   :  { %222 = vmatprep.mubr.f32.mxu0 %v3701_v0  ;;  %2909 = vmatpush1.bf16.msra.mxu0 %v3912_v18  ;;  %v3965_v21 = vpack.c.bf16 %v276_v17, %v274_v16  ;;  %v275_v24 = vld [vmem:[#allocation10 + $0x70] sm:$0xff] }
  0x82   :  { %357 = vmatmul.mubr.f32.vlgmr.msra.gmra.mrb[0].mxu1 %v3701_v0  ;;  %2911 = vmatprep.subr.bf16.mxu0 %v3914_v19 }
  0x83   :  { %2941 = vmatpush1.bf16.msra.mxu1 %v3848_v13  ;;  %638 = vmatprep.mubr.f32.mxu1 %v3701_v0 }
  0x84   :  { %2943 = vmatprep.subr.bf16.mxu1 %v3852_v22  ;;  %2787 = vmatmul.mubr.msk.f32.gmra.mrb[2].mxu0 %vm145_vm0, %v116_v27  ;;  %v3970_v27 = vpack.c.bf16 %v275_v24, %v273_v23 }
  0x85   :  { %462 = vmatprep.mubr.f32.mxu0 %v3701_v0  ;;  %2913 = vmatpush1.bf16.msra.mxu0 %v3919_v25 }
  0x86   :  { %2915 = vmatprep.subr.bf16.mxu0 %v3922_v28 }
  0x87   :  { %2945 = vmatpush1.bf16.msra.mxu1 %v3854_v26 }
  0x88   :  { %2947 = vmatprep.subr.bf16.mxu1 %v3857_v35 }
  0x89   :  { %2917 = vmatpush1.bf16.msra.mxu0 %v3927_v33 }
  0x8a   :  { %2919 = vmatprep.subr.bf16.mxu0 %v3930_v34 }
  0x8b   :  { %2949 = vmatpush1.bf16.msra.mxu1 %v3860_v39 }
  0x8c   :  { %2951 = vmatprep.subr.bf16.mxu1 %v3863_v44 }
  0x8d   :  { %2921 = vmatpush1.bf16.msra.mxu0 %v3933_v38 }
  0x8e   :  { %2923 = vmatprep.subr.bf16.mxu0 %v3937_v45 }
  0x8f   :  { %2953 = vmatpush1.bf16.msra.mxu1 %v3866_v48 }
  0x90   :  { %2955 = vmatprep.subr.bf16.mxu1 %v3910_v14 }
 0x153   :  { %v218_v55 = vpop.f32.mrb[0].mxu0 }
 0x154   :  { %v220_v56 = vpop.f32.mrb[1].mxu0  ;;  %v3906_v1 = vadd.f32 %v218_v55, %v3903_v63  ;;  %v261_v55 = vld [vmem:[#allocation10] sm:$0xff] }
 0x155   :  { %v358_v57 = vpop.f32.mrb[0].mxu1  ;;  %v3893_v58 = vadd.f32 %v220_v56, %v3890_v54  ;;  %v263_v56 = vld [vmem:[#allocation10 + $0x10] sm:$0xff] }
 0x156   :  { %v360_v59 = vpop.f32.mrb[1].mxu1  ;;  %v363_v2 = vadd.f32 %v358_v57, %v3906_v1  ;;  %v266_v57 = vld [vmem:[#allocation10 + $0x28] sm:$0xff] }
 0x157   :  { %v3896_v60 = vadd.f32 %v360_v59, %v3893_v58  ;;  %v268_v59 = vld [vmem:[#allocation10 + $0x38] sm:$0xff]  ;;  %v3989_v29 = vpop.f32.mrb[2].mxu0 }
 0x158   :  { %v2788_v3 = vmul.f32 -1.442695, %v363_v2  ;;  %v3991_v30 = vpop.f32.mrb[3].mxu0 }
 0x159   :  { %3335 = vtanh.f32 %v3896_v60  ;;  %v2789_v49 = vmul.f32 -1.442695, %v3896_v60 }
 0x15a   :  { %3337 = vpow2.f32 %v2788_v3  ;;  %v3945_v3 = vpack.c.bf16 %v263_v56, %v261_v55 }
 0x163   :  { %v3336_v61 = vpop.eup %3335 }
 0x164   :  { %380 = vrot.lane.b32.xlu0 %v3336_v61, %s3702_s12  ;;  %v3338_v4 = vpop.eup %3337 }
 0x165   :  { %v371_v5 = vadd.f32 1.0, %v3338_v4 }
 0x167   :  { %3339 = vrcp.f32 %v371_v5  ;;  %v3947_v5 = vpack.c.bf16 %v268_v59, %v266_v57 }
 0x171   :  { %v3340_v6 = vpop.eup %3339 }
 0x172   :  { %v378_v40 = vmul.f32 0.0, %v3340_v6 }
 0x1d6   :  { %v381_v7 = vpop.permute.xlu0 %380 }
 0x1d7   :  { %v383_v8 = vmul.f32 %v3340_v6, %v381_v7  ;;  %v265_v6 = vld [vmem:[#allocation10 + $0x20] sm:$0xff]  ;;  %v267_v7 = vld [vmem:[#allocation10 + $0x30] sm:$0xff] }
 0x1d8   :  { %v3952_v60 = vpack.c.bf16 %v267_v7, %v265_v6 }
 0x1d9   :  { %385 = vrot.lane.b32.xlu0 %v383_v8, %s3702_s12  ;;  %v270_v8 = vld [vmem:[#allocation10 + $0x48] sm:$0xff] }
 0x1da   :  { %v3956_v11 = vpack.c.bf16 %v272_v10, %v270_v8 }
 0x24b   :  { %v386_v43 = vpop.permute.xlu0 %385 }
 0x24c   :  { %v3939_v46 = vadd.f32 %v386_v43, %v378_v40  ;;  %v277_v40 = vld [vmem:[%s4394_s6] sm:$0x3] }
 0x24d   :  { %v3999_v42 = vrot.slane %v277_v40, %v141_v52  ;;  %v4007_v57 = vrot.slane %v277_v40, %v137_v62 }
 0x24e   :  { %3341 = vtanh.f32 %v3939_v46  ;;  %v667_v62 = vrot.slane %v3939_v46, 6 }
 0x24f   :  { %3343 = vpow2.f32 %v2789_v49 }
 0x258   :  { %v3342_v47 = vpop.eup %3341 }
 0x259   :  { %391 = vrot.lane.b32.xlu1 %v3342_v47, %s3702_s12  ;;  %v3344_v50 = vpop.eup %3343 }
 0x25a   :  { %v372_v53 = vadd.f32 1.0, %v3344_v50 }
 0x25c   :  { %3345 = vrcp.f32 %v372_v53 }
 0x266   :  { %v3346_v61 = vpop.eup %3345 }
 0x2cb   :  { %v392_v2 = vpop.permute.xlu1 %391 }
 0x2cc   :  { %v394_v4 = vmul.f32 %v3346_v61, %v392_v2 }
 0x2ce   :  { %2790 = vmatmul.mubr.msk.f32.vlgmr.msra.gmra.mrb[4].mxu0 %vm145_vm0, %v394_v4  ;;  %2793 = vmatmul.mubr.msk.f32.vlgmr.msra.gmra.mrb[2].mxu1 %vm145_vm0, %v394_v4 }
 0x2cf   :  { %2925 = vmatpush1.bf16.msra.mxu0 %v3945_v3  ;;  %535 = vmatprep.mubr.f32.mxu0 %v3701_v0 }
 0x2d0   :  { %2927 = vmatprep.subr.bf16.mxu0 %v3947_v5  ;;  %2957 = vmatpush1.bf16.msra.mxu1 %v3912_v18 }
 0x2d1   :  { %2959 = vmatprep.subr.bf16.mxu1 %v3914_v19  ;;  %754 = vmatprep.mubr.f32.mxu1 %v3701_v0 }
 0x2d3   :  { %2929 = vmatpush1.bf16.msra.mxu0 %v3952_v60 }
 0x2d4   :  { %2931 = vmatprep.subr.bf16.mxu0 %v3956_v11  ;;  %2961 = vmatpush1.bf16.msra.mxu1 %v3919_v25 }
 0x2d5   :  { %2963 = vmatprep.subr.bf16.mxu1 %v3922_v28 }
 0x2d7   :  { %2933 = vmatpush1.bf16.msra.mxu0 %v3962_v20 }
 0x2d8   :  { %2935 = vmatprep.subr.bf16.mxu0 %v3965_v21  ;;  %2965 = vmatpush1.bf16.msra.mxu1 %v3927_v33 }
 0x2d9   :  { %2967 = vmatprep.subr.bf16.mxu1 %v3930_v34 }
 0x2db   :  { %2937 = vmatpush1.bf16.msra.mxu0 %v3970_v27 }
 0x2dc   :  { %2987 = vmatprep.subr.bf16.mxu0 %v3846_v9  ;;  %2969 = vmatpush1.bf16.msra.mxu1 %v3933_v38 }
 0x2dd   :  { %2971 = vmatprep.subr.bf16.mxu1 %v3937_v45 }
 0x2de   :  { %536 = vmatmul.mubr.f32.vlgmr.msra.gmra.mrb[4].mxu0 %v3701_v0 }
 0x2df   :  { %2989 = vmatpush1.bf16.msra.mxu0 %v3848_v13  ;;  %933 = vmatprep.mubr.f32.mxu0 %v3701_v0 }
 0x2e0   :  { %2991 = vmatprep.subr.bf16.mxu0 %v3852_v22 }
 0x2e3   :  { %2993 = vmatpush1.bf16.msra.mxu0 %v3854_v26 }
 0x2e4   :  { %2995 = vmatprep.subr.bf16.mxu0 %v3857_v35 }
 0x2e7   :  { %2997 = vmatpush1.bf16.msra.mxu0 %v3860_v39 }
 0x2e8   :  { %2999 = vmatprep.subr.bf16.mxu0 %v3863_v44 }
 0x2eb   :  { %3001 = vmatpush1.bf16.msra.mxu0 %v3866_v48 }
 0x2ec   :  { %3003 = vmatprep.subr.bf16.mxu0 %v3910_v14 }
 0x3a1   :  { %v640_v31 = vpop.f32.mrb[2].mxu1 }
 0x3a2   :  { %v642_v32 = vpop.f32.mrb[3].mxu1  ;;  %v647_v53 = vrot.slane %v640_v31, 6 }
 0x3a3   :  { %v648_v36 = vrot.slane %v642_v32, 6 }
 0x3a4   :  { %v651_v55 = vadd.f32 %v647_v53, %v3906_v1 }
 0x3a5   :  { %v652_v37 = vadd.f32 %v648_v36, %v3893_v58 }
 0x3a6   :  { %v2794_v56 = vmul.f32 -1.442695, %v651_v55 }
 0x3a7   :  { %3347 = vtanh.f32 %v652_v37 }
 0x3b1   :  { %v3348_v41 = vpop.eup %3347  ;;  %v537_v43 = vpop.f32.mrb[4].mxu0 }
 0x3b2   :  { %v539_v47 = vpop.f32.mrb[5].mxu0  ;;  %671 = vrot.lane.b32.xlu1 %v3348_v41, %s3702_s12  ;;  %v3290_v59 = vadd.f32 %v537_v43, %v4007_v57  ;;  %v2795_v41 = vmul.f32 -1.442695, %v652_v37 }
 0x3b3   :  { %v3291_v49 = vadd.f32 %v539_v47, %v3999_v42 }
 0x3b4   :  { %v2791_v2 = vmul.f32 -1.442695, %v3290_v59 }
 0x3b5   :  { %3349 = vtanh.f32 %v3291_v49  ;;  %v2792_v47 = vmul.f32 -1.442695, %v3291_v49 }
 0x3b6   :  { %3351 = vpow2.f32 %v2794_v56 }
 0x3bf   :  { %v3350_v50 = vpop.eup %3349 }
 0x3c0   :  { %559 = vrot.lane.b32.xlu0 %v3350_v50, %s3702_s12  ;;  %v3352_v52 = vpop.eup %3351 }
 0x3c1   :  { %v659_v61 = vadd.f32 1.0, %v3352_v52 }
 0x3c3   :  { %3353 = vrcp.f32 %v659_v61 }
 0x3c4   :  { %3355 = vpow2.f32 %v2791_v2 }
 0x3cd   :  { %v3354_v4 = vpop.eup %3353 }
 0x3ce   :  { %v3356_v7 = vpop.eup %3355  ;;  %v669_v16 = vmul.f32 %v3354_v4, %v667_v62 }
 0x3cf   :  { %v550_v10 = vadd.f32 1.0, %v3356_v7 }
 0x3d1   :  { %3357 = vrcp.f32 %v550_v10 }
 0x3db   :  { %v3358_v12 = vpop.eup %3357 }
 0x3dc   :  { %v557_v31 = vmul.f32 0.0, %v3358_v12 }
 0x424   :  { %v672_v6 = vpop.permute.xlu1 %671 }
 0x425   :  { %v674_v8 = vmul.f32 %v3354_v4, %v672_v6 }
 0x427   :  { %676 = vrot.lane.b32.xlu1 %v674_v8, %s3702_s12 }
 0x432   :  { %v560_v15 = vpop.permute.xlu0 %559 }
 0x433   :  { %v562_v51 = vmul.f32 %v3358_v12, %v560_v15 }
 0x435   :  { %564 = vrot.lane.b32.xlu0 %v562_v51, %s3702_s12 }
 0x499   :  { %v677_v17 = vpop.permute.xlu1 %676 }
 0x49a   :  { %v4013_v23 = vadd.f32 %v677_v17, %v669_v16 }
 0x49c   :  { %3359 = vtanh.f32 %v4013_v23 }
 0x4a6   :  { %v3360_v24 = vpop.eup %3359 }
 0x4a7   :  { %682 = vrot.lane.b32.xlu1 %v3360_v24, %s3702_s12  ;;  %v565_v32 = vpop.permute.xlu0 %564 }
 0x4a8   :  { %v4017_v36 = vadd.f32 %v565_v32, %v557_v31 }
 0x4aa   :  { %3361 = vtanh.f32 %v4017_v36 }
 0x4ab   :  { %3363 = vpow2.f32 %v2795_v41 }
 0x4b4   :  { %v3362_v40 = vpop.eup %3361 }
 0x4b5   :  { %570 = vrot.lane.b32.xlu0 %v3362_v40, %s3702_s12  ;;  %v3364_v46 = vpop.eup %3363 }
 0x4b6   :  { %v660_v43 = vadd.f32 1.0, %v3364_v46 }
 0x4b8   :  { %3365 = vrcp.f32 %v660_v43 }
 0x4b9   :  { %3367 = vpow2.f32 %v2792_v47 }
 0x4c2   :  { %v3366_v50 = vpop.eup %3365 }
 0x4c3   :  { %v3368_v55 = vpop.eup %3367 }
 0x4c4   :  { %v551_v59 = vadd.f32 1.0, %v3368_v55 }
 0x4c6   :  { %3369 = vrcp.f32 %v551_v59 }
 0x4d0   :  { %v3370_v37 = vpop.eup %3369 }
 0x519   :  { %v683_v53 = vpop.permute.xlu1 %682 }
 0x51a   :  { %v685_v56 = vmul.f32 %v3366_v50, %v683_v53 }
 0x51c   :  { %v687_v52 = vrot.slane %v685_v56, 2 }
 0x51e   :  { %2796 = vmatmul.mubr.msk.f32.vlgmr.msra.gmra.mrb[4].mxu1 %vm145_vm0, %v687_v52  ;;  %2800 = vmatmul.mubr.msk.f32.vlgmr.msra.gmra.mrb[6].mxu0 %vm145_vm0, %v687_v52  ;;  %v962_v52 = vrot.slane %v4013_v23, 6 }
 0x51f   :  { %2973 = vmatpush1.bf16.msra.mxu1 %v3945_v3  ;;  %830 = vmatprep.mubr.f32.mxu1 %v3701_v0 }
 0x520   :  { %2975 = vmatprep.subr.bf16.mxu1 %v3947_v5  ;;  %3005 = vmatpush1.bf16.msra.mxu0 %v3912_v18 }
 0x521   :  { %3007 = vmatprep.subr.bf16.mxu0 %v3914_v19  ;;  %1049 = vmatprep.mubr.f32.mxu0 %v3701_v0 }
 0x523   :  { %2977 = vmatpush1.bf16.msra.mxu1 %v3952_v60 }
 0x524   :  { %2979 = vmatprep.subr.bf16.mxu1 %v3956_v11  ;;  %3009 = vmatpush1.bf16.msra.mxu0 %v3919_v25 }
 0x525   :  { %3011 = vmatprep.subr.bf16.mxu0 %v3922_v28 }
 0x527   :  { %2981 = vmatpush1.bf16.msra.mxu1 %v3962_v20  ;;  %v571_v49 = vpop.permute.xlu0 %570 }
 0x528   :  { %2983 = vmatprep.subr.bf16.mxu1 %v3965_v21  ;;  %3013 = vmatpush1.bf16.msra.mxu0 %v3927_v33  ;;  %v4038_v61 = vmul.f32 %v3370_v37, %v571_v49 }
 0x529   :  { %3015 = vmatprep.subr.bf16.mxu0 %v3930_v34 }
 0x52b   :  { %2985 = vmatpush1.bf16.msra.mxu1 %v3970_v27 }
 0x52c   :  { %3035 = vmatprep.subr.bf16.mxu1 %v3846_v9  ;;  %3017 = vmatpush1.bf16.msra.mxu0 %v3933_v38 }
 0x52d   :  { %3019 = vmatprep.subr.bf16.mxu0 %v3937_v45 }
 0x52e   :  { %2797 = vmatmul.mubr.msk.f32.vlgmr.msra.gmra.mrb[4].mxu1 %vm145_vm0, %v4038_v61 }
 0x52f   :  { %3037 = vmatpush1.bf16.msra.mxu1 %v3848_v13  ;;  %1228 = vmatprep.mubr.f32.mxu1 %v3701_v0 }
 0x530   :  { %3039 = vmatprep.subr.bf16.mxu1 %v3852_v22 }
 0x533   :  { %3041 = vmatpush1.bf16.msra.mxu1 %v3854_v26 }
 0x534   :  { %3043 = vmatprep.subr.bf16.mxu1 %v3857_v35 }
 0x537   :  { %3045 = vmatpush1.bf16.msra.mxu1 %v3860_v39 }
 0x538   :  { %3047 = vmatprep.subr.bf16.mxu1 %v3863_v44 }
 0x53b   :  { %3049 = vmatpush1.bf16.msra.mxu1 %v3866_v48 }
 0x53c   :  { %3051 = vmatprep.subr.bf16.mxu1 %v3910_v14 }
 0x5f1   :  { %v935_v2 = vpop.f32.mrb[6].mxu0 }
 0x5f2   :  { %v937_v4 = vpop.f32.mrb[7].mxu0  ;;  %v942_v62 = vrot.slane %v935_v2, 4 }
 0x5f3   :  { %v943_v6 = vrot.slane %v937_v4, 4 }
 0x5f4   :  { %v946_v16 = vadd.f32 %v942_v62, %v3906_v1 }
 0x5f5   :  { %v947_v7 = vadd.f32 %v943_v6, %v3893_v58 }
 0x5f6   :  { %v2801_v17 = vmul.f32 -1.442695, %v946_v16 }
 0x5f7   :  { %3371 = vtanh.f32 %v947_v7  ;;  %v2802_v23 = vmul.f32 -1.442695, %v947_v7 }
 0x601   :  { %v3372_v8 = vpop.eup %3371  ;;  %v832_v10 = vpop.f32.mrb[4].mxu1 }
 0x602   :  { %v834_v12 = vpop.f32.mrb[5].mxu1  ;;  %966 = vrot.lane.b32.xlu1 %v3372_v8, %s3702_s12  ;;  %v3292_v31 = vadd.f32 %v832_v10, %v4007_v57 }
 0x603   :  { %v3293_v15 = vadd.f32 %v834_v12, %v3999_v42 }
 0x604   :  { %v2798_v40 = vmul.f32 -1.442695, %v3292_v31 }
 0x605   :  { %3373 = vtanh.f32 %v3293_v15  ;;  %v2799_v62 = vmul.f32 -1.442695, %v3293_v15 }
 0x606   :  { %3375 = vpow2.f32 %v2801_v17 }
 0x60f   :  { %v3374_v51 = vpop.eup %3373 }
 0x610   :  { %854 = vrot.lane.b32.xlu0 %v3374_v51, %s3702_s12  ;;  %v3376_v24 = vpop.eup %3375 }
 0x611   :  { %v954_v32 = vadd.f32 1.0, %v3376_v24 }
 0x613   :  { %3377 = vrcp.f32 %v954_v32 }
 0x614   :  { %3379 = vpow2.f32 %v2798_v40 }
 0x61d   :  { %v3378_v41 = vpop.eup %3377 }
 0x61e   :  { %v3380_v43 = vpop.eup %3379  ;;  %v964_v59 = vmul.f32 %v3378_v41, %v962_v52 }
 0x61f   :  { %v845_v50 = vadd.f32 1.0, %v3380_v43 }
 0x621   :  { %3381 = vrcp.f32 %v845_v50 }
 0x62b   :  { %v3382_v53 = vpop.eup %3381 }
 0x62c   :  { %v852_v4 = vmul.f32 %v3382_v53, %v4017_v36 }
 0x674   :  { %v967_v46 = vpop.permute.xlu1 %966 }
 0x675   :  { %v969_v47 = vmul.f32 %v3378_v41, %v967_v46 }
 0x677   :  { %971 = vrot.lane.b32.xlu1 %v969_v47, %s3702_s12 }
 0x682   :  { %v855_v55 = vpop.permute.xlu0 %854 }
 0x683   :  { %v857_v56 = vmul.f32 %v3382_v53, %v855_v55 }
 0x685   :  { %859 = vrot.lane.b32.xlu0 %v857_v56, %s3702_s12 }
 0x6e9   :  { %v972_v37 = vpop.permute.xlu1 %971 }
 0x6ea   :  { %v4063_v49 = vadd.f32 %v972_v37, %v964_v59 }
 0x6ec   :  { %3383 = vtanh.f32 %v4063_v49 }
 0x6f6   :  { %v3384_v2 = vpop.eup %3383 }
 0x6f7   :  { %977 = vrot.lane.b32.xlu1 %v3384_v2, %s3702_s12  ;;  %v860_v6 = vpop.permute.xlu0 %859 }
 0x6f8   :  { %v4068_v8 = vadd.f32 %v860_v6, %v852_v4 }
 0x6fa   :  { %3385 = vtanh.f32 %v4068_v8 }
 0x6fb   :  { %3387 = vpow2.f32 %v2802_v23 }
 0x704   :  { %v3386_v10 = vpop.eup %3385 }
 0x705   :  { %865 = vrot.lane.b32.xlu0 %v3386_v10, %s3702_s12  ;;  %v3388_v12 = vpop.eup %3387 }
 0x706   :  { %v955_v51 = vadd.f32 1.0, %v3388_v12 }
 0x708   :  { %3389 = vrcp.f32 %v955_v51 }
 0x709   :  { %3391 = vpow2.f32 %v2799_v62 }
 0x712   :  { %v3390_v16 = vpop.eup %3389 }
 0x713   :  { %v3392_v24 = vpop.eup %3391 }
 0x714   :  { %v846_v32 = vadd.f32 1.0, %v3392_v24 }
 0x716   :  { %3393 = vrcp.f32 %v846_v32 }
 0x720   :  { %v3394_v7 = vpop.eup %3393 }
 0x769   :  { %v978_v17 = vpop.permute.xlu1 %977 }
 0x76a   :  { %v980_v31 = vmul.f32 %v3390_v16, %v978_v17 }
 0x76c   :  { %v982_v36 = vrot.slane %v980_v31, 4  ;;  %v1257_v31 = vrot.slane %v4063_v49, 6 }
 0x76e   :  { %2803 = vmatmul.mubr.msk.f32.vlgmr.msra.gmra.mrb[8].mxu0 %vm145_vm0, %v982_v36  ;;  %2807 = vmatmul.mubr.msk.f32.vlgmr.msra.gmra.mrb[6].mxu1 %vm145_vm0, %v982_v36 }
 0x76f   :  { %3021 = vmatpush1.bf16.msra.mxu0 %v3945_v3  ;;  %1125 = vmatprep.mubr.f32.mxu0 %v3701_v0 }
 0x770   :  { %3023 = vmatprep.subr.bf16.mxu0 %v3947_v5  ;;  %3053 = vmatpush1.bf16.msra.mxu1 %v3912_v18 }
 0x771   :  { %3055 = vmatprep.subr.bf16.mxu1 %v3914_v19  ;;  %1344 = vmatprep.mubr.f32.mxu1 %v3701_v0 }
 0x773   :  { %3025 = vmatpush1.bf16.msra.mxu0 %v3952_v60 }
 0x774   :  { %3027 = vmatprep.subr.bf16.mxu0 %v3956_v11  ;;  %3057 = vmatpush1.bf16.msra.mxu1 %v3919_v25 }
 0x775   :  { %3059 = vmatprep.subr.bf16.mxu1 %v3922_v28 }
 0x777   :  { %3029 = vmatpush1.bf16.msra.mxu0 %v3962_v20  ;;  %v866_v15 = vpop.permute.xlu0 %865 }
 0x778   :  { %3031 = vmatprep.subr.bf16.mxu0 %v3965_v21  ;;  %3061 = vmatpush1.bf16.msra.mxu1 %v3927_v33  ;;  %v4089_v40 = vmul.f32 %v3394_v7, %v866_v15 }
 0x779   :  { %3063 = vmatprep.subr.bf16.mxu1 %v3930_v34 }
 0x77b   :  { %3033 = vmatpush1.bf16.msra.mxu0 %v3970_v27 }
 0x77c   :  { %3083 = vmatprep.subr.bf16.mxu0 %v3846_v9  ;;  %3065 = vmatpush1.bf16.msra.mxu1 %v3933_v38 }
 0x77d   :  { %3067 = vmatprep.subr.bf16.mxu1 %v3937_v45 }
 0x77e   :  { %2804 = vmatmul.mubr.msk.f32.vlgmr.msra.gmra.mrb[8].mxu0 %vm145_vm0, %v4089_v40 }
 0x77f   :  { %3085 = vmatpush1.bf16.msra.mxu0 %v3848_v13  ;;  %1523 = vmatprep.mubr.f32.mxu0 %v3701_v0 }
 0x780   :  { %3087 = vmatprep.subr.bf16.mxu0 %v3852_v22 }
 0x783   :  { %3089 = vmatpush1.bf16.msra.mxu0 %v3854_v26 }
 0x784   :  { %3091 = vmatprep.subr.bf16.mxu0 %v3857_v35 }
 0x787   :  { %3093 = vmatpush1.bf16.msra.mxu0 %v3860_v39 }
 0x788   :  { %3095 = vmatprep.subr.bf16.mxu0 %v3863_v44 }
 0x78b   :  { %3097 = vmatpush1.bf16.msra.mxu0 %v3866_v48 }
 0x78c   :  { %3099 = vmatprep.subr.bf16.mxu0 %v3910_v14 }
 0x841   :  { %v1230_v41 = vpop.f32.mrb[6].mxu1 }
 0x842   :  { %v1232_v46 = vpop.f32.mrb[7].mxu1  ;;  %v1237_v59 = vrot.slane %v1230_v41, 2 }
 0x843   :  { %v1238_v43 = vrot.slane %v1232_v46, 2 }
 0x844   :  { %v1241_v37 = vadd.f32 %v1237_v59, %v3906_v1 }
 0x845   :  { %v1242_v47 = vadd.f32 %v1238_v43, %v3893_v58 }
 0x846   :  { %v2808_v2 = vmul.f32 -1.442695, %v1241_v37 }
 0x847   :  { %3395 = vtanh.f32 %v1242_v47  ;;  %v2809_v49 = vmul.f32 -1.442695, %v1242_v47 }
 0x851   :  { %v3396_v50 = vpop.eup %3395  ;;  %v1127_v53 = vpop.f32.mrb[8].mxu0 }
 0x852   :  { %v1129_v55 = vpop.f32.mrb[9].mxu0  ;;  %1261 = vrot.lane.b32.xlu1 %v3396_v50, %s3702_s12  ;;  %v3294_v58 = vadd.f32 %v1127_v53, %v4007_v57 }
 0x853   :  { %v3295_v56 = vadd.f32 %v1129_v55, %v3999_v42 }
 0x854   :  { %v2805_v10 = vmul.f32 -1.442695, %v3294_v58 }
 0x855   :  { %3397 = vtanh.f32 %v3295_v56 }
 0x856   :  { %3399 = vpow2.f32 %v2808_v2 }
 0x85f   :  { %v3398_v52 = vpop.eup %3397 }
 0x860   :  { %1149 = vrot.lane.b32.xlu0 %v3398_v52, %s3702_s12  ;;  %v3400_v4 = vpop.eup %3399  ;;  %v2806_v52 = vmul.f32 -1.442695, %v3295_v56 }
 0x861   :  { %v1249_v6 = vadd.f32 1.0, %v3400_v4 }
 0x863   :  { %3401 = vrcp.f32 %v1249_v6 }
 0x864   :  { %3403 = vpow2.f32 %v2805_v10  ;;  %v4158_v10 = vadd.f32 %v3991_v30, %v3890_v54  ;;  %v4166_v54 = vadd.f32 %v3989_v29, %v3903_v63 }
 0x86d   :  { %v3402_v23 = vpop.eup %3401 }
 0x86e   :  { %v3404_v51 = vpop.eup %3403  ;;  %v1259_v36 = vmul.f32 %v3402_v23, %v1257_v31 }
 0x86f   :  { %v1140_v16 = vadd.f32 1.0, %v3404_v51 }
 0x871   :  { %3405 = vrcp.f32 %v1140_v16 }
 0x87b   :  { %v3406_v17 = vpop.eup %3405 }
 0x87c   :  { %v1147_v41 = vmul.f32 %v3406_v17, %v4068_v8 }
 0x8c4   :  { %v1262_v12 = vpop.permute.xlu1 %1261 }
 0x8c5   :  { %v1264_v62 = vmul.f32 %v3402_v23, %v1262_v12 }
 0x8c7   :  { %1266 = vrot.lane.b32.xlu1 %v1264_v62, %s3702_s12 }
 0x8d2   :  { %v1150_v24 = vpop.permute.xlu0 %1149 }
 0x8d3   :  { %v1152_v1 = vmul.f32 %v3406_v17, %v1150_v24 }
 0x8d5   :  { %1154 = vrot.lane.b32.xlu0 %v1152_v1, %s3702_s12 }
 0x939   :  { %v1267_v32 = vpop.permute.xlu1 %1266 }
 0x93a   :  { %v4114_v7 = vadd.f32 %v1267_v32, %v1259_v36 }
 0x93c   :  { %3407 = vtanh.f32 %v4114_v7 }
 0x946   :  { %v3408_v15 = vpop.eup %3407 }
 0x947   :  { %1272 = vrot.lane.b32.xlu1 %v3408_v15, %s3702_s12  ;;  %v1155_v46 = vpop.permute.xlu0 %1154 }
 0x948   :  { %v4119_v43 = vadd.f32 %v1155_v46, %v1147_v41 }
 0x94a   :  { %3409 = vtanh.f32 %v4119_v43 }
 0x94b   :  { %3411 = vpow2.f32 %v2809_v49 }
 0x954   :  { %v3410_v50 = vpop.eup %3409 }
 0x955   :  { %1160 = vrot.lane.b32.xlu0 %v3410_v50, %s3702_s12  ;;  %v3412_v53 = vpop.eup %3411 }
 0x956   :  { %v1250_v55 = vadd.f32 1.0, %v3412_v53 }
 0x958   :  { %3413 = vrcp.f32 %v1250_v55 }
 0x959   :  { %3415 = vpow2.f32 %v2806_v52 }
 0x962   :  { %v3414_v59 = vpop.eup %3413 }
 0x963   :  { %v3416_v2 = vpop.eup %3415 }
 0x964   :  { %v1141_v58 = vadd.f32 1.0, %v3416_v2 }
 0x966   :  { %3417 = vrcp.f32 %v1141_v58 }
 0x970   :  { %v3418_v47 = vpop.eup %3417 }
 0x9b9   :  { %v1273_v37 = vpop.permute.xlu1 %1272 }
 0x9ba   :  { %v1275_v4 = vmul.f32 %v3414_v59, %v1273_v37  ;;  %v1546_v59 = vrot.slane %v4114_v7, 6 }
 0x9bc   :  { %v1277_v8 = vrot.slane %v1275_v4, 6 }
 0x9be   :  { %2810 = vmatmul.mubr.msk.f32.vlgmr.msra.gmra.mrb[8].mxu1 %vm145_vm0, %v1277_v8  ;;  %2814 = vmatmul.mubr.msk.f32.vlgmr.msra.gmra.mrb[10].mxu0 %vm145_vm0, %v1277_v8 }
 0x9bf   :  { %3069 = vmatpush1.bf16.msra.mxu1 %v3945_v3  ;;  %1420 = vmatprep.mubr.f32.mxu1 %v3701_v0 }
 0x9c0   :  { %3071 = vmatprep.subr.bf16.mxu1 %v3947_v5  ;;  %3101 = vmatpush1.bf16.msra.mxu0 %v3912_v18 }
 0x9c1   :  { %3103 = vmatprep.subr.bf16.mxu0 %v3914_v19  ;;  %1632 = vmatprep.mubr.f32.mxu0 %v3701_v0 }
 0x9c3   :  { %3073 = vmatpush1.bf16.msra.mxu1 %v3952_v60 }
 0x9c4   :  { %3075 = vmatprep.subr.bf16.mxu1 %v3956_v11  ;;  %3105 = vmatpush1.bf16.msra.mxu0 %v3919_v25 }
 0x9c5   :  { %3107 = vmatprep.subr.bf16.mxu0 %v3922_v28 }
 0x9c7   :  { %3077 = vmatpush1.bf16.msra.mxu1 %v3962_v20  ;;  %v1161_v56 = vpop.permute.xlu0 %1160 }
 0x9c8   :  { %3079 = vmatprep.subr.bf16.mxu1 %v3965_v21  ;;  %3109 = vmatpush1.bf16.msra.mxu0 %v3927_v33  ;;  %v4140_v6 = vmul.f32 %v3418_v47, %v1161_v56 }
 0x9c9   :  { %3111 = vmatprep.subr.bf16.mxu0 %v3930_v34 }
 0x9cb   :  { %3081 = vmatpush1.bf16.msra.mxu1 %v3970_v27 }
 0x9cc   :  { %3131 = vmatprep.subr.bf16.mxu1 %v3846_v9  ;;  %3113 = vmatpush1.bf16.msra.mxu0 %v3933_v38 }
 0x9cd   :  { %3115 = vmatprep.subr.bf16.mxu0 %v3937_v45 }
 0x9ce   :  { %2811 = vmatmul.mubr.msk.f32.vlgmr.msra.gmra.mrb[8].mxu1 %vm145_vm0, %v4140_v6 }
 0x9cf   :  { %3133 = vmatpush1.bf16.msra.mxu1 %v3848_v13  ;;  %1811 = vmatprep.mubr.f32.mxu1 %v3701_v0 }
 0x9d0   :  { %3135 = vmatprep.subr.bf16.mxu1 %v3852_v22 }
 0x9d3   :  { %3137 = vmatpush1.bf16.msra.mxu1 %v3854_v26 }
 0x9d4   :  { %3139 = vmatprep.subr.bf16.mxu1 %v3857_v35 }
 0x9d7   :  { %3141 = vmatpush1.bf16.msra.mxu1 %v3860_v39 }
 0x9d8   :  { %3143 = vmatprep.subr.bf16.mxu1 %v3863_v44 }
 0x9db   :  { %3145 = vmatpush1.bf16.msra.mxu1 %v3866_v48 }
 0x9dc   :  { %3147 = vmatprep.subr.bf16.mxu1 %v3910_v14 }
 0xa91   :  { %v1525_v23 = vpop.f32.mrb[10].mxu0 }
 0xa92   :  { %v1527_v12 = vpop.f32.mrb[11].mxu0  ;;  %v1530_v30 = vadd.f32 %v1525_v23, %v4166_v54 }
 0xa93   :  { %v1531_v51 = vadd.f32 %v1527_v12, %v4158_v10 }
 0xa94   :  { %v2815_v31 = vmul.f32 -1.442695, %v1530_v30 }
 0xa95   :  { %3419 = vtanh.f32 %v1531_v51  ;;  %v2816_v7 = vmul.f32 -1.442695, %v1531_v51 }
 0xa9f   :  { %v3420_v62 = vpop.eup %3419 }
 0xaa0   :  { %1550 = vrot.lane.b32.xlu1 %v3420_v62, %s3702_s12 }
 0xaa1   :  { %v1422_v16 = vpop.f32.mrb[8].mxu1 }
 0xaa2   :  { %v1424_v17 = vpop.f32.mrb[9].mxu1  ;;  %v3296_v36 = vadd.f32 %v1422_v16, %v4007_v57 }
 0xaa3   :  { %v3297_v24 = vadd.f32 %v1424_v17, %v3999_v42 }
 0xaa4   :  { %v2812_v15 = vmul.f32 -1.442695, %v3296_v36 }
 0xaa5   :  { %3421 = vtanh.f32 %v3297_v24  ;;  %v2813_v62 = vmul.f32 -1.442695, %v3297_v24 }
 0xaa6   :  { %3423 = vpow2.f32 %v2815_v31 }
 0xaa7   :  { %3425 = vpow2.f32 %v2812_v15 }
 0xaaf   :  { %v3422_v1 = vpop.eup %3421 }
 0xab0   :  { %1444 = vrot.lane.b32.xlu0 %v3422_v1, %s3702_s12  ;;  %v3424_v32 = vpop.eup %3423 }
 0xab1   :  { %v1538_v41 = vadd.f32 1.0, %v3424_v32  ;;  %v3426_v46 = vpop.eup %3425 }
 0xab2   :  { %v1435_v55 = vadd.f32 1.0, %v3426_v46 }
 0xab3   :  { %3427 = vrcp.f32 %v1538_v41 }
 0xab4   :  { %3429 = vrcp.f32 %v1435_v55 }
 0xabd   :  { %v3428_v50 = vpop.eup %3427 }
 0xabe   :  { %v3430_v63 = vpop.eup %3429  ;;  %v1548_v37 = vmul.f32 %v3428_v50, %v1546_v59 }
 0xabf   :  { %v1442_v58 = vmul.f32 %v3430_v63, %v4119_v43 }
 0xb12   :  { %v1551_v49 = vpop.permute.xlu1 %1550 }
 0xb13   :  { %v1553_v53 = vmul.f32 %v3428_v50, %v1551_v49 }
 0xb15   :  { %1555 = vrot.lane.b32.xlu1 %v1553_v53, %s3702_s12 }
 0xb22   :  { %v1445_v29 = vpop.permute.xlu0 %1444 }
 0xb23   :  { %v1447_v52 = vmul.f32 %v3430_v63, %v1445_v29 }
 0xb25   :  { %1449 = vrot.lane.b32.xlu0 %v1447_v52, %s3702_s12 }
 0xb87   :  { %v1556_v2 = vpop.permute.xlu1 %1555 }
 0xb88   :  { %v4173_v4 = vadd.f32 %v1556_v2, %v1548_v37 }
 0xb8a   :  { %3431 = vtanh.f32 %v4173_v4 }
 0xb94   :  { %v3432_v8 = vpop.eup %3431 }
 0xb95   :  { %1561 = vrot.lane.b32.xlu1 %v3432_v8, %s3702_s12 }
 0xb97   :  { %v1450_v47 = vpop.permute.xlu0 %1449 }
 0xb98   :  { %v4178_v56 = vadd.f32 %v1450_v47, %v1442_v58 }
 0xb9a   :  { %3433 = vtanh.f32 %v4178_v56 }
 0xb9b   :  { %3435 = vpow2.f32 %v2816_v7 }
 0xb9c   :  { %3437 = vpow2.f32 %v2813_v62 }
 0xba4   :  { %v3434_v23 = vpop.eup %3433 }
 0xba5   :  { %1455 = vrot.lane.b32.xlu0 %v3434_v23, %s3702_s12  ;;  %v3436_v12 = vpop.eup %3435 }
 0xba6   :  { %v1539_v16 = vadd.f32 1.0, %v3436_v12  ;;  %v3438_v17 = vpop.eup %3437 }
 0xba7   :  { %v1436_v43 = vadd.f32 1.0, %v3438_v17 }
 0xba8   :  { %3439 = vrcp.f32 %v1539_v16 }
 0xba9   :  { %3441 = vrcp.f32 %v1436_v43 }
 0xbb2   :  { %v3440_v1 = vpop.eup %3439 }
 0xbb3   :  { %v3442_v51 = vpop.eup %3441 }
 0xc07   :  { %v1562_v30 = vpop.permute.xlu1 %1561 }
 0xc08   :  { %v1564_v31 = vmul.f32 %v3440_v1, %v1562_v30  ;;  %v1840_v30 = vrot.slane %v4173_v4, 6 }
 0xc0a   :  { %2817 = vmatmul.mubr.msk.f32.vlgmr.msra.gmra.mrb[12].mxu0 %vm145_vm0, %v1564_v31  ;;  %2821 = vmatmul.mubr.msk.f32.vlgmr.msra.gmra.mrb[10].mxu1 %vm145_vm0, %v1564_v31 }
 0xc0b   :  { %3117 = vmatpush1.bf16.msra.mxu0 %v3945_v3  ;;  %1708 = vmatprep.mubr.f32.mxu0 %v3701_v0 }
 0xc0c   :  { %3119 = vmatprep.subr.bf16.mxu0 %v3947_v5  ;;  %3149 = vmatpush1.bf16.msra.mxu1 %v3912_v18 }
 0xc0d   :  { %3151 = vmatprep.subr.bf16.mxu1 %v3914_v19  ;;  %1927 = vmatprep.mubr.f32.mxu1 %v3701_v0 }
 0xc0f   :  { %3121 = vmatpush1.bf16.msra.mxu0 %v3952_v60 }
 0xc10   :  { %3123 = vmatprep.subr.bf16.mxu0 %v3956_v11  ;;  %3153 = vmatpush1.bf16.msra.mxu1 %v3919_v25 }
 0xc11   :  { %3155 = vmatprep.subr.bf16.mxu1 %v3922_v28 }
 0xc13   :  { %3125 = vmatpush1.bf16.msra.mxu0 %v3962_v20 }
 0xc14   :  { %3127 = vmatprep.subr.bf16.mxu0 %v3965_v21  ;;  %3157 = vmatpush1.bf16.msra.mxu1 %v3927_v33 }
 0xc15   :  { %3159 = vmatprep.subr.bf16.mxu1 %v3930_v34 }
 0xc17   :  { %3129 = vmatpush1.bf16.msra.mxu0 %v3970_v27  ;;  %v1456_v24 = vpop.permute.xlu0 %1455 }
 0xc18   :  { %v4199_v36 = vmul.f32 %v3442_v51, %v1456_v24  ;;  %3179 = vmatprep.subr.bf16.mxu0 %v3846_v9  ;;  %3161 = vmatpush1.bf16.msra.mxu1 %v3933_v38 }
 0xc19   :  { %3163 = vmatprep.subr.bf16.mxu1 %v3937_v45 }
 0xc1a   :  { %2818 = vmatmul.mubr.msk.f32.vlgmr.msra.gmra.mrb[12].mxu0 %vm145_vm0, %v4199_v36 }
 0xc1b   :  { %3181 = vmatpush1.bf16.msra.mxu0 %v3848_v13  ;;  %2106 = vmatprep.mubr.f32.mxu0 %v3701_v0 }
 0xc1c   :  { %3183 = vmatprep.subr.bf16.mxu0 %v3852_v22 }
 0xc1f   :  { %3185 = vmatpush1.bf16.msra.mxu0 %v3854_v26 }
 0xc20   :  { %3187 = vmatprep.subr.bf16.mxu0 %v3857_v35 }
 0xc23   :  { %3189 = vmatpush1.bf16.msra.mxu0 %v3860_v39 }
 0xc24   :  { %3191 = vmatprep.subr.bf16.mxu0 %v3863_v44 }
 0xc27   :  { %3193 = vmatpush1.bf16.msra.mxu0 %v3866_v48 }
 0xc28   :  { %3195 = vmatprep.subr.bf16.mxu0 %v3910_v14 }
 0xcdd   :  { %v1813_v32 = vpop.f32.mrb[10].mxu1 }
 0xcde   :  { %v1815_v15 = vpop.f32.mrb[11].mxu1  ;;  %v1820_v29 = vrot.slane %v1813_v32, 6 }
 0xcdf   :  { %v1821_v41 = vrot.slane %v1815_v15, 6 }
 0xce0   :  { %v1824_v52 = vadd.f32 %v1820_v29, %v4166_v54 }
 0xce1   :  { %v1825_v46 = vadd.f32 %v1821_v41, %v4158_v10 }
 0xce2   :  { %v2822_v59 = vmul.f32 -1.442695, %v1824_v52 }
 0xce3   :  { %3443 = vtanh.f32 %v1825_v46  ;;  %v2823_v4 = vmul.f32 -1.442695, %v1825_v46 }
 0xced   :  { %v3444_v50 = vpop.eup %3443  ;;  %v1710_v49 = vpop.f32.mrb[12].mxu0 }
 0xcee   :  { %v1712_v53 = vpop.f32.mrb[13].mxu0  ;;  %1844 = vrot.lane.b32.xlu1 %v3444_v50, %s3702_s12  ;;  %v3298_v2 = vadd.f32 %v1710_v49, %v4007_v57 }
 0xcef   :  { %v3299_v55 = vadd.f32 %v1712_v53, %v3999_v42 }
 0xcf0   :  { %v2819_v58 = vmul.f32 -1.442695, %v3298_v2 }
 0xcf1   :  { %3445 = vtanh.f32 %v3299_v55 }
 0xcf2   :  { %3447 = vpow2.f32 %v2822_v59 }
 0xcfb   :  { %v3446_v63 = vpop.eup %3445 }
 0xcfc   :  { %1732 = vrot.lane.b32.xlu0 %v3446_v63, %s3702_s12  ;;  %v3448_v37 = vpop.eup %3447  ;;  %v2820_v63 = vmul.f32 -1.442695, %v3299_v55 }
 0xcfd   :  { %v1832_v8 = vadd.f32 1.0, %v3448_v37 }
 0xcff   :  { %3449 = vrcp.f32 %v1832_v8 }
 0xd00   :  { %3451 = vpow2.f32 %v2819_v58 }
 0xd09   :  { %v3450_v47 = vpop.eup %3449 }
 0xd0a   :  { %v3452_v7 = vpop.eup %3451  ;;  %v1842_v31 = vmul.f32 %v3450_v47, %v1840_v30 }
 0xd0b   :  { %v1723_v62 = vadd.f32 1.0, %v3452_v7 }
 0xd0d   :  { %3453 = vrcp.f32 %v1723_v62 }
 0xd17   :  { %v3454_v16 = vpop.eup %3453 }
 0xd18   :  { %v1730_v32 = vmul.f32 %v3454_v16, %v4178_v56 }
 0xd60   :  { %v1845_v23 = vpop.permute.xlu1 %1844 }
 0xd61   :  { %v1847_v12 = vmul.f32 %v3450_v47, %v1845_v23 }
 0xd63   :  { %1849 = vrot.lane.b32.xlu1 %v1847_v12, %s3702_s12 }
 0xd6e   :  { %v1733_v17 = vpop.permute.xlu0 %1732 }
 0xd6f   :  { %v1735_v1 = vmul.f32 %v3454_v16, %v1733_v17 }
 0xd71   :  { %1737 = vrot.lane.b32.xlu0 %v1735_v1, %s3702_s12 }
 0xdd5   :  { %v1850_v43 = vpop.permute.xlu1 %1849 }
 0xdd6   :  { %v4224_v51 = vadd.f32 %v1850_v43, %v1842_v31 }
 0xdd8   :  { %3455 = vtanh.f32 %v4224_v51 }
 0xde2   :  { %v3456_v24 = vpop.eup %3455 }
 0xde3   :  { %1855 = vrot.lane.b32.xlu1 %v3456_v24, %s3702_s12  ;;  %v1738_v15 = vpop.permute.xlu0 %1737 }
 0xde4   :  { %v4229_v41 = vadd.f32 %v1738_v15, %v1730_v32 }
 0xde6   :  { %3457 = vtanh.f32 %v4229_v41 }
 0xde7   :  { %3459 = vpow2.f32 %v2823_v4 }
 0xdf0   :  { %v3458_v50 = vpop.eup %3457 }
 0xdf1   :  { %1743 = vrot.lane.b32.xlu0 %v3458_v50, %s3702_s12  ;;  %v3460_v49 = vpop.eup %3459  ;;  %v2135_v50 = vrot.slane %v4224_v51, 6 }
 0xdf2   :  { %v1833_v53 = vadd.f32 1.0, %v3460_v49 }
 0xdf4   :  { %3461 = vrcp.f32 %v1833_v53 }
 0xdf5   :  { %3463 = vpow2.f32 %v2820_v63 }
 0xdfe   :  { %v3462_v29 = vpop.eup %3461 }
 0xdff   :  { %v3464_v59 = vpop.eup %3463 }
 0xe00   :  { %v1724_v2 = vadd.f32 1.0, %v3464_v59 }
 0xe02   :  { %3465 = vrcp.f32 %v1724_v2 }
 0xe0c   :  { %v3466_v46 = vpop.eup %3465 }
 0xe55   :  { %v1856_v52 = vpop.permute.xlu1 %1855 }
 0xe56   :  { %v1858_v37 = vmul.f32 %v3462_v29, %v1856_v52 }
 0xe58   :  { %v1860_v56 = vrot.slane %v1858_v37, 2 }
 0xe5a   :  { %2824 = vmatmul.mubr.msk.f32.vlgmr.msra.gmra.mrb[12].mxu1 %vm145_vm0, %v1860_v56  ;;  %2828 = vmatmul.mubr.msk.f32.vlgmr.msra.gmra.mrb[14].mxu0 %vm145_vm0, %v1860_v56 }
 0xe5b   :  { %3165 = vmatpush1.bf16.msra.mxu1 %v3945_v3  ;;  %2003 = vmatprep.mubr.f32.mxu1 %v3701_v0 }
 0xe5c   :  { %3167 = vmatprep.subr.bf16.mxu1 %v3947_v5  ;;  %3197 = vmatpush1.bf16.msra.mxu0 %v3912_v18 }
 0xe5d   :  { %3199 = vmatprep.subr.bf16.mxu0 %v3914_v19  ;;  %2222 = vmatprep.mubr.f32.mxu0 %v3701_v0 }
 0xe5f   :  { %3169 = vmatpush1.bf16.msra.mxu1 %v3952_v60 }
 0xe60   :  { %3171 = vmatprep.subr.bf16.mxu1 %v3956_v11  ;;  %3201 = vmatpush1.bf16.msra.mxu0 %v3919_v25 }
 0xe61   :  { %3203 = vmatprep.subr.bf16.mxu0 %v3922_v28 }
 0xe63   :  { %3173 = vmatpush1.bf16.msra.mxu1 %v3962_v20  ;;  %v1744_v55 = vpop.permute.xlu0 %1743 }
 0xe64   :  { %3175 = vmatprep.subr.bf16.mxu1 %v3965_v21  ;;  %3205 = vmatpush1.bf16.msra.mxu0 %v3927_v33  ;;  %v4250_v8 = vmul.f32 %v3466_v46, %v1744_v55 }
 0xe65   :  { %3207 = vmatprep.subr.bf16.mxu0 %v3930_v34 }
 0xe67   :  { %3177 = vmatpush1.bf16.msra.mxu1 %v3970_v27 }
 0xe68   :  { %3227 = vmatprep.subr.bf16.mxu1 %v3846_v9  ;;  %3209 = vmatpush1.bf16.msra.mxu0 %v3933_v38 }
 0xe69   :  { %3211 = vmatprep.subr.bf16.mxu0 %v3937_v45 }
 0xe6a   :  { %2825 = vmatmul.mubr.msk.f32.vlgmr.msra.gmra.mrb[12].mxu1 %vm145_vm0, %v4250_v8 }
 0xe6b   :  { %3229 = vmatpush1.bf16.msra.mxu1 %v3848_v13  ;;  %2401 = vmatprep.mubr.f32.mxu1 %v3701_v0 }
 0xe6c   :  { %3231 = vmatprep.subr.bf16.mxu1 %v3852_v22 }
 0xe6f   :  { %3233 = vmatpush1.bf16.msra.mxu1 %v3854_v26 }
 0xe70   :  { %3235 = vmatprep.subr.bf16.mxu1 %v3857_v35 }
 0xe73   :  { %3237 = vmatpush1.bf16.msra.mxu1 %v3860_v39 }
 0xe74   :  { %3239 = vmatprep.subr.bf16.mxu1 %v3863_v44 }
 0xe77   :  { %3241 = vmatpush1.bf16.msra.mxu1 %v3866_v48 }
 0xe78   :  { %3243 = vmatprep.subr.bf16.mxu1 %v3910_v14 }
 0xf2d   :  { %v2108_v9 = vpop.f32.mrb[14].mxu0 }
 0xf2e   :  { %v2110_v58 = vpop.f32.mrb[15].mxu0  ;;  %v2115_v39 = vrot.slane %v2108_v9, 4 }
 0xf2f   :  { %v2116_v47 = vrot.slane %v2110_v58, 4 }
 0xf30   :  { %v2119_v44 = vadd.f32 %v2115_v39, %v4166_v54 }
 0xf31   :  { %v2120_v13 = vadd.f32 %v2116_v47, %v4158_v10 }
 0xf32   :  { %v2829_v48 = vmul.f32 -1.442695, %v2119_v44 }
 0xf33   :  { %3467 = vtanh.f32 %v2120_v13  ;;  %v2830_v51 = vmul.f32 -1.442695, %v2120_v13 }
 0xf3d   :  { %v3468_v23 = vpop.eup %3467  ;;  %v2005_v22 = vpop.f32.mrb[12].mxu1 }
 0xf3e   :  { %v2007_v7 = vpop.f32.mrb[13].mxu1  ;;  %2139 = vrot.lane.b32.xlu1 %v3468_v23, %s3702_s12  ;;  %v3300_v12 = vadd.f32 %v2005_v22, %v4007_v57 }
 0xf3f   :  { %v3301_v26 = vadd.f32 %v2007_v7, %v3999_v42 }
 0xf40   :  { %v2826_v16 = vmul.f32 -1.442695, %v3300_v12 }
 0xf41   :  { %3469 = vtanh.f32 %v3301_v26  ;;  %v2827_v46 = vmul.f32 -1.442695, %v3301_v26 }
 0xf42   :  { %3471 = vpow2.f32 %v2829_v48 }
 0xf4b   :  { %v3470_v35 = vpop.eup %3469 }
 0xf4c   :  { %2027 = vrot.lane.b32.xlu0 %v3470_v35, %s3702_s12  ;;  %v3472_v14 = vpop.eup %3471 }
 0xf4d   :  { %v2127_v62 = vadd.f32 1.0, %v3472_v14 }
 0xf4f   :  { %3473 = vrcp.f32 %v2127_v62 }
 0xf50   :  { %3475 = vpow2.f32 %v2826_v16 }
 0xf59   :  { %v3474_v17 = vpop.eup %3473 }
 0xf5a   :  { %v3476_v30 = vpop.eup %3475  ;;  %v2137_v4 = vmul.f32 %v3474_v17, %v2135_v50 }
 0xf5b   :  { %v2018_v43 = vadd.f32 1.0, %v3476_v30 }
 0xf5d   :  { %3477 = vrcp.f32 %v2018_v43 }
 0xf67   :  { %v3478_v24 = vpop.eup %3477 }
 0xf68   :  { %v2025_v29 = vmul.f32 %v3478_v24, %v4229_v41 }
 0xfb0   :  { %v2140_v1 = vpop.permute.xlu1 %2139 }
 0xfb1   :  { %v2142_v31 = vmul.f32 %v3474_v17, %v2140_v1 }
 0xfb3   :  { %2144 = vrot.lane.b32.xlu1 %v2142_v31, %s3702_s12 }
 0xfbe   :  { %v2028_v32 = vpop.permute.xlu0 %2027 }
 0xfbf   :  { %v2030_v15 = vmul.f32 %v3478_v24, %v2028_v32 }
 0xfc1   :  { %2032 = vrot.lane.b32.xlu0 %v2030_v15, %s3702_s12 }
0x1025   :  { %v2145_v49 = vpop.permute.xlu1 %2144 }
0x1026   :  { %v4275_v53 = vadd.f32 %v2145_v49, %v2137_v4 }
0x1028   :  { %3479 = vtanh.f32 %v4275_v53  ;;  %v2430_v4 = vrot.slane %v4275_v53, 6 }
0x1032   :  { %v3480_v63 = vpop.eup %3479 }
0x1033   :  { %2150 = vrot.lane.b32.xlu1 %v3480_v63, %s3702_s12  ;;  %v2033_v52 = vpop.permute.xlu0 %2032 }
0x1034   :  { %v4280_v59 = vadd.f32 %v2033_v52, %v2025_v29 }
0x1036   :  { %3481 = vtanh.f32 %v4280_v59 }
0x1037   :  { %3483 = vpow2.f32 %v2830_v51 }
0x1040   :  { %v3482_v37 = vpop.eup %3481 }
0x1041   :  { %2038 = vrot.lane.b32.xlu0 %v3482_v37, %s3702_s12  ;;  %v3484_v56 = vpop.eup %3483 }
0x1042   :  { %v2128_v2 = vadd.f32 1.0, %v3484_v56 }
0x1044   :  { %3485 = vrcp.f32 %v2128_v2 }
0x1045   :  { %3487 = vpow2.f32 %v2827_v46 }
0x104e   :  { %v3486_v55 = vpop.eup %3485 }
0x104f   :  { %v3488_v58 = vpop.eup %3487 }
0x1050   :  { %v2019_v23 = vadd.f32 1.0, %v3488_v58 }
0x1052   :  { %3489 = vrcp.f32 %v2019_v23 }
0x10a5   :  { %v2151_v9 = vpop.permute.xlu1 %2150 }
0x10a6   :  { %v2153_v47 = vmul.f32 %v3486_v55, %v2151_v9 }
0x10a8   :  { %v2155_v41 = vrot.slane %v2153_v47, 4 }
0x10aa   :  { %2831 = vmatmul.mubr.msk.f32.vlgmr.msra.gmra.mrb[16].mxu0 %vm145_vm0, %v2155_v41  ;;  %2835 = vmatmul.mubr.msk.f32.vlgmr.msra.gmra.mrb[14].mxu1 %vm145_vm0, %v2155_v41 }
0x10ab   :  { %3213 = vmatpush1.bf16.msra.mxu0 %v3945_v3  ;;  %2298 = vmatprep.mubr.f32.mxu0 %v3701_v0 }
0x10ac   :  { %3215 = vmatprep.subr.bf16.mxu0 %v3947_v5  ;;  %3245 = vmatpush1.bf16.msra.mxu1 %v3912_v18  ;;  %v3490_v18 = vpop.eup %3489 }
0x10ad   :  { %3247 = vmatprep.subr.bf16.mxu1 %v3914_v19  ;;  %2517 = vmatprep.mubr.f32.mxu1 %v3701_v0 }
0x10af   :  { %3217 = vmatpush1.bf16.msra.mxu0 %v3952_v60 }
0x10b0   :  { %3219 = vmatprep.subr.bf16.mxu0 %v3956_v11  ;;  %3249 = vmatpush1.bf16.msra.mxu1 %v3919_v25 }
0x10b1   :  { %3251 = vmatprep.subr.bf16.mxu1 %v3922_v28 }
0x10b3   :  { %3221 = vmatpush1.bf16.msra.mxu0 %v3962_v20  ;;  %v2039_v19 = vpop.permute.xlu0 %2038 }
0x10b4   :  { %3223 = vmatprep.subr.bf16.mxu0 %v3965_v21  ;;  %3253 = vmatpush1.bf16.msra.mxu1 %v3927_v33  ;;  %v4301_v13 = vmul.f32 %v3490_v18, %v2039_v19  ;;  %v2637_v33 = vsel %vm2632_vm1, %v4250_v8, %v4199_v36 }
0x10b5   :  { %3255 = vmatprep.subr.bf16.mxu1 %v3930_v34 }
0x10b6   :  { %v2638_v25 = vsel %vm2632_vm1, %v4301_v13, %v4140_v6 }
0x10b7   :  { %3225 = vmatpush1.bf16.msra.mxu0 %v3970_v27  ;;  %v2651_v28 = vrot.slane %v2638_v25, 6 }
0x10b8   :  { %3257 = vmatpush1.bf16.msra.mxu1 %v3933_v38 }
0x10b9   :  { %3259 = vmatprep.subr.bf16.mxu1 %v3937_v45  ;;  %v4314_v34 = vsel %vm2659_vm2, %v2637_v33, %v2651_v28 }
0x10ba   :  { %2832 = vmatmul.mubr.msk.f32.vlgmr.msra.gmra.mrb[16].mxu0 %vm145_vm0, %v4301_v13 }
0x117d   :  { %v2403_v38 = vpop.f32.mrb[14].mxu1 }
0x117e   :  { %v2405_v22 = vpop.f32.mrb[15].mxu1  ;;  %v2410_v14 = vrot.slane %v2403_v38, 2 }
0x117f   :  { %v2411_v7 = vrot.slane %v2405_v22, 2 }
0x1180   :  { %v2414_v12 = vadd.f32 %v2410_v14, %v4166_v54  ;;  %v2672_v14 = vld [vmem:[#allocation11 + $0x20] sm:$0xff] }
0x1181   :  { %v2415_v45 = vadd.f32 %v2411_v7, %v4158_v10 }
0x1182   :  { %v2836_v62 = vmul.f32 -1.442695, %v2414_v12  ;;  %v2673_v12 = vld [vmem:[#allocation11 + $0x28] sm:$0xff] }
0x1183   :  { %3491 = vtanh.f32 %v2415_v45  ;;  %v2837_v46 = vmul.f32 -1.442695, %v2415_v45 }
0x118d   :  { %v3492_v26 = vpop.eup %3491  ;;  %v2300_v35 = vpop.f32.mrb[16].mxu0 }
0x118e   :  { %v2302_v39 = vpop.f32.mrb[17].mxu0  ;;  %2434 = vrot.lane.b32.xlu1 %v3492_v26, %s3702_s12  ;;  %v3302_v10 = vadd.f32 %v2300_v35, %v4007_v57  ;;  %v2669_v35 = vld [vmem:[#allocation11 + $0x8] sm:$0xff] }
0x118f   :  { %v3303_v44 = vadd.f32 %v2302_v39, %v3999_v42  ;;  %v2670_v39 = vld [vmem:[#allocation11 + $0x10] sm:$0xff] }
0x1190   :  { %v2833_v1 = vmul.f32 -1.442695, %v3302_v10 }
0x1191   :  { %3493 = vtanh.f32 %v3303_v44  ;;  %v2834_v9 = vmul.f32 -1.442695, %v3303_v44  ;;  %v2671_v44 = vld [vmem:[#allocation11 + $0x18] sm:$0xff] }
0x1192   :  { %3495 = vpow2.f32 %v2836_v62 }
0x119b   :  { %v3494_v48 = vpop.eup %3493 }
0x119c   :  { %2322 = vrot.lane.b32.xlu0 %v3494_v48, %s3702_s12  ;;  %v3496_v16 = vpop.eup %3495  ;;  %v3278_v48 = vpack.c.bf16 %v2671_v44, %v2670_v39 }
0x119d   :  { %v2422_v17 = vadd.f32 1.0, %v3496_v16 }
0x119f   :  { %3497 = vrcp.f32 %v2422_v17  ;;  %v2674_v17 = vld [vmem:[#allocation11 + $0x30] sm:$0xff] }
0x11a0   :  { %3499 = vpow2.f32 %v2833_v1  ;;  %v2675_v1 = vld [vmem:[#allocation11 + $0x38] sm:$0xff] }
0x11a9   :  { %v3498_v30 = vpop.eup %3497 }
0x11aa   :  { %v3500_v43 = vpop.eup %3499  ;;  %v2432_v49 = vmul.f32 %v3498_v30, %v2430_v4 }
0x11ab   :  { %v2313_v32 = vadd.f32 1.0, %v3500_v43 }
0x11ad   :  { %3501 = vrcp.f32 %v2313_v32 }
0x11b7   :  { %v3502_v15 = vpop.eup %3501 }
0x11b8   :  { %v2320_v37 = vmul.f32 %v3502_v15, %v4280_v59 }
0x1200   :  { %v2435_v31 = vpop.permute.xlu1 %2434 }
0x1201   :  { %v2437_v24 = vmul.f32 %v3498_v30, %v2435_v31  ;;  %v3286_v30 = vpack.c.bf16 %v2675_v1, %v2674_v17 }
0x1203   :  { %2439 = vrot.lane.b32.xlu1 %v2437_v24, %s3702_s12 }
0x120e   :  { %v2323_v50 = vpop.permute.xlu0 %2322 }
0x120f   :  { %v2325_v54 = vmul.f32 %v3502_v15, %v2323_v50 }
0x1211   :  { %2327 = vrot.lane.b32.xlu0 %v2325_v54, %s3702_s12  ;;  %v2635_v54 = vsel %vm2632_vm1, %v4140_v6, %v4301_v13 }
0x1275   :  { %v2440_v63 = vpop.permute.xlu1 %2439 }
0x1276   :  { %v2442_v29 = vadd.f32 %v2440_v63, %v2432_v49  ;;  %v2636_v49 = vsel %vm2632_vm1, %v4199_v36, %v4250_v8  ;;  %v2842_v36 = vld [vmem:[%s4396_s8] ss:$0 sm:$0xff] }
0x1278   :  { %3503 = vtanh.f32 %v2442_v29 }
0x1282   :  { %v3504_v52 = vpop.eup %3503 }
0x1283   :  { %2445 = vrot.lane.b32.xlu1 %v3504_v52, %s3702_s12  ;;  %v2328_v51 = vpop.permute.xlu0 %2327  ;;  %v2645_v52 = vrot.slane %v2635_v54, 4 }
0x1284   :  { %v4327_v56 = vadd.f32 %v2328_v51, %v2320_v37 }
0x1286   :  { %3505 = vtanh.f32 %v4327_v56 }
0x1287   :  { %3507 = vpow2.f32 %v2837_v46 }
0x1290   :  { %v3506_v2 = vpop.eup %3505 }
0x1291   :  { %2333 = vrot.lane.b32.xlu0 %v3506_v2, %s3702_s12  ;;  %v3508_v53 = vpop.eup %3507 }
0x1292   :  { %v2423_v55 = vadd.f32 1.0, %v3508_v53 }
0x1294   :  { %3509 = vrcp.f32 %v2423_v55 }
0x1295   :  { %3511 = vpow2.f32 %v2834_v9 }
0x129e   :  { %v3510_v58 = vpop.eup %3509 }
0x129f   :  { %v3512_v41 = vpop.eup %3511 }
0x12a0   :  { %v2314_v18 = vadd.f32 1.0, %v3512_v41 }
0x12a2   :  { %3513 = vrcp.f32 %v2314_v18 }
0x12ac   :  { %v3514_v19 = vpop.eup %3513 }
0x12f5   :  { %v2446_v47 = vpop.permute.xlu1 %2445 }
0x12f6   :  { %v2448_v23 = vmul.f32 %v3510_v58, %v2446_v47 }
0x12f8   :  { %v2450_v59 = vrot.slane %v2448_v23, 6 }
0x12fa   :  { %2838 = vmatmul.mubr.msk.f32.vlgmr.msra.gmra.mrb[16].mxu1 %vm145_vm0, %v2450_v59 }
0x12fb   :  { %3261 = vmatpush1.bf16.msra.mxu1 %v3945_v3  ;;  %2593 = vmatprep.mubr.f32.mxu1 %v3701_v0 }
0x12fc   :  { %3263 = vmatprep.subr.bf16.mxu1 %v3947_v5 }
0x12ff   :  { %3265 = vmatpush1.bf16.msra.mxu1 %v3952_v60 }
0x1300   :  { %3267 = vmatprep.subr.bf16.mxu1 %v3956_v11 }
0x1303   :  { %3269 = vmatpush1.bf16.msra.mxu1 %v3962_v20  ;;  %v2334_v25 = vpop.permute.xlu0 %2333 }
0x1304   :  { %3271 = vmatprep.subr.bf16.mxu1 %v3965_v21  ;;  %v2336_v28 = vmul.f32 %v3514_v19, %v2334_v25 }
0x1306   :  { %v2639_v3 = vsel %vm2632_vm1, %v2336_v28, %v4089_v40  ;;  %v2634_v15 = vsel %vm2632_vm1, %v4089_v40, %v2336_v28  ;;  %v2648_v40 = vrot.slane %v2636_v49, 2 }
0x1307   :  { %3273 = vmatpush1.bf16.msra.mxu1 %v3970_v27  ;;  %v2654_v0 = vrot.slane %v2639_v3, 4  ;;  %v2642_v29 = vrot.slane %v2634_v15, 6 }
0x1309   :  { %v4345_v5 = vsel %vm2661_vm3, %v4314_v34, %v2654_v0  ;;  %v2668_v34 = vld [vmem:[#allocation11] sm:$0xff] }
0x130a   :  { %2839 = vmatmul.mubr.msk.f32.vlgmr.msra.gmra.mrb[16].mxu1 %vm145_vm0, %v2336_v28 }
0x13dd   :  { %v2595_v60 = vpop.f32.mrb[16].mxu1 }
0x13de   :  { %v2597_v11 = vpop.f32.mrb[17].mxu1  ;;  %v3304_v27 = vadd.f32 %v2595_v60, %v4007_v57  ;;  %v3282_v57 = vpack.c.bf16 %v2673_v12, %v2672_v14 }
0x13df   :  { %v3305_v20 = vadd.f32 %v2597_v11, %v3999_v42  ;;  %v3274_v42 = vpack.c.bf16 %v2669_v35, %v2668_v34 }
0x13e0   :  { %v2840_v33 = vmul.f32 -1.442695, %v3304_v27 }
0x13e1   :  { %3515 = vtanh.f32 %v3305_v20  ;;  %3275 = vmatprep.subr.bf16.mxu0 %v3274_v42  ;;  %v2841_v43 = vmul.f32 -1.442695, %v3305_v20 }
0x13e2   :  { %3517 = vpow2.f32 %v2840_v33  ;;  %3277 = vmatpush3.bf16.msra.mxu0 %v3274_v42 }
0x13e3   :  { %3279 = vmatprep.subr.bf16.mxu0 %v3278_v48 }
0x13e6   :  { %3281 = vmatpush3.bf16.msra.mxu0 %v3278_v48 }
0x13e7   :  { %3283 = vmatprep.subr.bf16.mxu0 %v3282_v57 }
0x13ea   :  { %3285 = vmatpush3.bf16.msra.mxu0 %v3282_v57 }
0x13eb   :  { %v3516_v21 = vpop.eup %3515  ;;  %3287 = vmatprep.subr.bf16.mxu0 %v3286_v30 }
0x13ec   :  { %2617 = vrot.lane.b32.xlu1 %v3516_v21, %s3702_s12  ;;  %v3518_v38 = vpop.eup %3517 }
0x13ed   :  { %v2608_v22 = vadd.f32 1.0, %v3518_v38 }
0x13ee   :  { %3289 = vmatpush3.bf16.msra.mxu0 %v3286_v30 }
0x13ef   :  { %3519 = vrcp.f32 %v2608_v22 }
0x13f9   :  { %v3520_v7 = vpop.eup %3519 }
0x13fa   :  { %v2615_v62 = vmul.f32 %v3520_v7, %v4327_v56 }
0x145e   :  { %v2618_v45 = vpop.permute.xlu1 %2617 }
0x145f   :  { %v2620_v26 = vmul.f32 %v3520_v7, %v2618_v45 }
0x1461   :  { %2622 = vrot.lane.b32.xlu0 %v2620_v26, %s3702_s12 }
0x14d3   :  { %v2623_v16 = vpop.permute.xlu0 %2622 }
0x14d4   :  { %v2625_v10 = vadd.f32 %v2623_v16, %v2615_v62 }
0x14d6   :  { %3521 = vtanh.f32 %v2625_v10 }
0x14d7   :  { %3523 = vpow2.f32 %v2841_v43 }
0x14e0   :  { %v3522_v31 = vpop.eup %3521 }
0x14e1   :  { %2628 = vrot.lane.b32.xlu1 %v3522_v31, %s3702_s12  ;;  %v3524_v24 = vpop.eup %3523 }
0x14e2   :  { %v2609_v32 = vadd.f32 1.0, %v3524_v24 }
0x14e4   :  { %3525 = vrcp.f32 %v2609_v32 }
0x14ee   :  { %v3526_v50 = vpop.eup %3525 }
0x1553   :  { %v2629_v4 = vpop.permute.xlu1 %2628 }
0x1554   :  { %v2631_v63 = vmul.f32 %v3526_v50, %v2629_v4 }
0x1556   :  { %v2633_v37 = vsel %vm2632_vm1, %v4038_v61, %v2631_v63  ;;  %v2640_v51 = vsel %vm2632_vm1, %v2631_v63, %v4038_v61 }
0x1557   :  { %v2657_v56 = vrot.slane %v2640_v51, 2  ;;  %v2660_v2 = vsel %vm2659_vm2, %v2633_v37, %v2642_v29 }
0x1558   :  { %v2662_v6 = vsel %vm2661_vm3, %v2660_v2, %v2645_v52 }
0x1559   :  { %v2664_v13 = vsel %vm2663_vm4, %v2662_v6, %v2648_v40  ;;  %v2667_v46 = vsel %vm2663_vm4, %v4345_v5, %v2657_v56 }
0x155a   :  { %2871 = vmatprep.mubr.msk.f32.mxu0 %vm145_vm0, %v2664_v13 }
0x155b   :  { %2872 = vmatmul.mubr.msk.f32.vlgmr.msra.gmra.mrb[18].mxu0 %vm145_vm0, %v2667_v46 }
0x162e   :  { %v2873_v61 = vpop.f32.mrb[18].mxu0 }
0x162f   :  { %v2761_v8 = vadd.f32 %v2873_v61, %v2842_v36  ;;  %v2755_v53 = vpop.f32.mrb[19].mxu0 }
0x1630   :  { %v2756_v55 = vadd.f32 %v2842_v36, %v2755_v53 }
0x1631   :  { %2765 = vst [vmem:[#allocation13 + $0x8] sm:$0xff] %v2761_v8 }
0x1632   :  { %2764 = vst [vmem:[#allocation13] sm:$0xff] %v2756_v55 }
0x1633   :  { %3670 = shalt.err (!%p3667_p10)
}
0x1634   :  { %s3671_s8 = scalar_lea.hbm %s4397_s9, 256 }
0x1635   :  { %p3672_p11 = scmp.ne.s32.totalorder %s4397_s9, %s3671_s8  ;;  %p3675_p12 = scmp.lt.u32.totalorder %s3671_s8, %s4397_s9 }
0x1637   :  { %p3677_p13 = pnand %p3675_p12, %p3672_p11 }
0x1639   :  { %3680 = shalt.err (!%p3677_p13)
}
0x163a   :  { %2777 = dma.vmem_to_hbm [thread:$0]  %s2772_s25, 256, %s4397_s9, [#allocation4], %s3696_s4, %s3696_s4, %s3697_s24  }
0x163b   :  { %3689 = dma.done.wait [#allocation4], 256  }
0x163c   :  { %3690 = vsyncadd [#allocation4], 4294967040 }
0x163d   :  { %2781 = vsyncpa [#allocation3], 1 }
0x163e   :  { %2782 = vsyncpa [#allocation6], 1 }
0x163f   :  { %2783 = vsyncpa [#allocation9], 1 }
0x1640   :  { %2784 = vsyncpa [#allocation12], 1 }
0x1641   :  { %2785 = vsyncpa [#allocation4], 1 }

</bundles_post_ra>
